<compile_context>
chip_gen: v7x
topology: tpu7x:2x2x1
jax: 0.10.0
libtpu: 0.0.40
codegen_flags: <defaults>
</compile_context>

<pallas_src>
import functools

import jax
import jax.numpy as jnp
from jax.experimental import pallas as pl
from jax.experimental.pallas import tpu as pltpu


CFG = dict(
    vocab_size=64,
    type_vocab_size=2,
    max_position=16,
    hidden=32,        # == args.num_filters (pooler_output dim)
    heads=2,
    layers=2,
    intermediate=64,
    class_num=3,
)

NPAD = 128  # lane-padded classifier output width (sliced to class_num outside)


# -----------------------------------------------------------------------------
# Fused whole-model Pallas kernel
# -----------------------------------------------------------------------------
def _bert_fused_kernel(
    # activations / mask (batch flattened into sublanes)
    emb_ref,                      # (M, H)  word+pos+type embedding sum, M = B*S
    mask_ref,                     # (M, M)  block-diagonal additive attention mask
    # embedding LN
    emb_ln_g_ref, emb_ln_b_ref,   # (1, H)
    # fused attention projections, stacked per layer
    wqkv_ref, bqkv_ref,           # (L, H, 3H) bf16, (L, 1, 3H) f32  [Q|K|V]
    wo_ref, bo_ref,               # (L, H, H)  bf16, (L, 1, H)  f32
    attn_ln_g_ref, attn_ln_b_ref, # (L, 1, H)
    # FFN, stacked per layer
    ffn_in_w_ref, ffn_in_b_ref,   # (L, H, I) bf16, (L, 1, I)
    ffn_out_w_ref, ffn_out_b_ref, # (L, I, H) bf16, (L, 1, H)
    ffn_ln_g_ref, ffn_ln_b_ref,   # (L, 1, H)
    # pooler + classifier
    pool_w_ref, pool_b_ref,       # (H, H) bf16, (1, H)
    cls_w_ref, cls_b_ref,         # (H, NPAD) bf16, (1, NPAD)
    # output
    out_ref,                      # (B, NPAD)
    *, B, S, H, nH, L,
):
    Dh = H // nH
    M = B * S
    scale = 1.0 / float(Dh) ** 0.5
    bf16 = jnp.bfloat16

    def layer_norm(x, g, b):
        mean = jnp.mean(x, axis=-1, keepdims=True)
        var = jnp.mean(jnp.square(x - mean), axis=-1, keepdims=True)
        inv = jax.lax.rsqrt(var + 1e-12)
        return (x - mean) * inv * g + b

    def gelu(y):
        # TODO(synk): HF BertModel's default act is erf-based GELU; tanh approx differs ~1e-3.
        c = jnp.float32(0.7978845608028654)  # sqrt(2/pi)
        return 0.5 * y * (1.0 + jnp.tanh(c * (y + 0.044715 * y * y * y)))

    # Per-head lane masks (heads concatenated on the lane axis), hoisted out of
    # the layer loop so the broadcasts are built exactly once.
    lane = jax.lax.broadcasted_iota(jnp.int32, (1, H), 1)
    head_masks = [
        jnp.where((lane >= hh * Dh) & (lane < (hh + 1) * Dh), 1.0, 0.0).astype(jnp.float32)
        for hh in range(nH)
    ]

    amask = mask_ref[...]                                                  # (M, M)
    h = layer_norm(emb_ref[...], emb_ln_g_ref[...], emb_ln_b_ref[...])    # (M, H)

    for l in range(L):
        # ---- fused QKV projection: one MXU push per layer ----
        qkv = (jnp.dot(h.astype(bf16), wqkv_ref[l],
                       preferred_element_type=jnp.float32) + bqkv_ref[l])  # (M, 3H)
        q = qkv[:, 0:H]                       # (M, H)  heads on lanes
        k = qkv[:, H:2 * H].astype(bf16)      # (M, H)
        v = qkv[:, 2 * H:3 * H]               # (M, H)

        # ---- per-head attention via head-lane masking (no 16-lane slicing) ----
        ctx = None
        for hh in range(nH):
            qh = (q * head_masks[hh]).astype(bf16)
            # NT-form dot_general: contract last dims, no XLU transpose of K.
            s = (jax.lax.dot_general(qh, k, (((1,), (1,)), ((), ())),
                                     preferred_element_type=jnp.float32) * scale
                 + amask)                                                  # (M, M)
            s = s - jnp.max(s, axis=-1, keepdims=True)
            p = jnp.exp(s)
            p = p * pl.reciprocal(jnp.sum(p, axis=-1, keepdims=True), approx=True)
            vh = (v * head_masks[hh]).astype(bf16)   # head hh lands in its own lanes
            c = jnp.dot(p.astype(bf16), vh, preferred_element_type=jnp.float32)
            ctx = c if ctx is None else ctx + c                            # (M, H)

        # single output projection per layer
        attn_out = (jnp.dot(ctx.astype(bf16), wo_ref[l],
                            preferred_element_type=jnp.float32) + bo_ref[l])
        h = layer_norm(h + attn_out, attn_ln_g_ref[l], attn_ln_b_ref[l])

        # ---- feed-forward ----
        ffn = gelu(jnp.dot(h.astype(bf16), ffn_in_w_ref[l],
                           preferred_element_type=jnp.float32) + ffn_in_b_ref[l])
        ffn_out = (jnp.dot(ffn.astype(bf16), ffn_out_w_ref[l],
                           preferred_element_type=jnp.float32) + ffn_out_b_ref[l])
        h = layer_norm(h + ffn_out, ffn_ln_g_ref[l], ffn_ln_b_ref[l])

    # ---- pooler (dense + tanh on [CLS]) + classifier, hoisted epilogue ----
    cls_rows = jnp.concatenate([h[b * S:b * S + 1, :] for b in range(B)], axis=0)  # (B, H)
    pooled = jnp.tanh(
        jnp.dot(cls_rows.astype(bf16), pool_w_ref[...],
                preferred_element_type=jnp.float32) + pool_b_ref[...])
    pred = (jnp.dot(pooled.astype(bf16), cls_w_ref[...],
                    preferred_element_type=jnp.float32) + cls_b_ref[...])  # (B, NPAD)
    out_ref[...] = pred.astype(out_ref.dtype)                             # one lane-dense store


# -----------------------------------------------------------------------------
# Parameter init (deterministic) — weights pre-stacked / pre-padded for the kernel
# -----------------------------------------------------------------------------
def init_params(key, cfg):
    H, I, L = cfg["hidden"], cfg["intermediate"], cfg["layers"]
    C = cfg["class_num"]
    wdt = jnp.bfloat16  # matmul weights stored bf16 (f32 accumulation in-kernel)

    def nrm(k, shape, scale=0.02):
        return scale * jax.random.normal(k, shape, dtype=jnp.float32)

    keys = iter(jax.random.split(key, 10))

    cls_w = nrm(next(keys), (H, C))
    # pre-pad classifier head to NPAD lanes once, at init time
    cls_w_pad = jnp.zeros((H, NPAD), jnp.float32).at[:, :C].set(cls_w)
    cls_b_pad = jnp.zeros((1, NPAD), jnp.float32)

    p = {
        "word_emb": nrm(next(keys), (cfg["vocab_size"], H)),
        "pos_emb": nrm(next(keys), (cfg["max_position"], H)),
        "type_emb": nrm(next(keys), (cfg["type_vocab_size"], H)),
        "emb_ln_g": jnp.ones((1, H), jnp.float32),
        "emb_ln_b": jnp.zeros((1, H), jnp.float32),
        # fused per-layer QKV projection: columns = [Q (heads on lanes) | K | V]
        "wqkv": nrm(next(keys), (L, H, 3 * H)).astype(wdt),
        "bqkv": jnp.zeros((L, 1, 3 * H), jnp.float32),
        "wo": nrm(next(keys), (L, H, H)).astype(wdt),
        "bo": jnp.zeros((L, 1, H), jnp.float32),
        "attn_ln_g": jnp.ones((L, 1, H), jnp.float32),
        "attn_ln_b": jnp.zeros((L, 1, H), jnp.float32),
        # per-layer FFN
        "ffn_in_w": nrm(next(keys), (L, H, I)).astype(wdt),
        "ffn_in_b": jnp.zeros((L, 1, I), jnp.float32),
        "ffn_out_w": nrm(next(keys), (L, I, H)).astype(wdt),
        "ffn_out_b": jnp.zeros((L, 1, H), jnp.float32),
        "ffn_ln_g": jnp.ones((L, 1, H), jnp.float32),
        "ffn_ln_b": jnp.zeros((L, 1, H), jnp.float32),
        # pooler + classifier
        "pool_w": nrm(next(keys), (H, H)).astype(wdt),
        "pool_b": jnp.zeros((1, H), jnp.float32),
        "cls_w": cls_w_pad.astype(wdt),
        "cls_b": cls_b_pad,
    }
    return p


# -----------------------------------------------------------------------------
# Model forward (== MyModel.forward): one pallas_call for the whole network
# -----------------------------------------------------------------------------
def my_model_forward(params, input_ids, attention_mask, cfg):
    B, S = input_ids.shape
    H = cfg["hidden"]
    nH = cfg["heads"]
    L = cfg["layers"]
    I = cfg["intermediate"]
    C = cfg["class_num"]
    M = B * S

    # ---- embeddings (gathers are JAX glue; token_type_ids are all zero) ----
    positions = jnp.arange(S, dtype=jnp.int32)
    emb = (
        jnp.take(params["word_emb"], input_ids, axis=0)
        + jnp.take(params["pos_emb"], positions, axis=0)[None, :, :]
        + params["type_emb"][0][None, None, :]
    ).reshape(M, H)                                               # (M, H)

    # block-diagonal additive attention mask over the flattened batch:
    # -10000 across batch boundaries and at padded key positions
    batch_ids = jnp.repeat(jnp.arange(B, dtype=jnp.int32), S)     # (M,)
    key_ok = attention_mask.reshape(M).astype(jnp.int32) == 1     # (M,)
    allowed = (batch_ids[:, None] == batch_ids[None, :]) & key_ok[None, :]
    mask_add = jnp.where(allowed, 0.0, -10000.0).astype(jnp.float32)   # (M, M)

    operands = (
        emb, mask_add,
        params["emb_ln_g"], params["emb_ln_b"],
        params["wqkv"], params["bqkv"],
        params["wo"], params["bo"],
        params["attn_ln_g"], params["attn_ln_b"],
        params["ffn_in_w"], params["ffn_in_b"],
        params["ffn_out_w"], params["ffn_out_b"],
        params["ffn_ln_g"], params["ffn_ln_b"],
        params["pool_w"], params["pool_b"],
        params["cls_w"], params["cls_b"],
    )

    # advisory cost estimate for XLA scheduling
    flops = L * (
        2 * M * H * (3 * H)            # fused QKV projection
        + nH * (2 * M * M * H)         # masked scores
        + nH * (2 * M * M * H)         # masked contexts
        + 2 * M * H * H                # output projection
        + 2 * 2 * M * H * I            # FFN in/out
    )
    flops += 2 * B * H * H + 2 * B * H * NPAD
    transcendentals = L * (M * I + nH * M * M) + B * H
    bytes_accessed = sum(int(x.size) * x.dtype.itemsize for x in operands) + B * NPAD * 4

    out_pad = pl.pallas_call(
        functools.partial(_bert_fused_kernel, B=B, S=S, H=H, nH=nH, L=L),
        out_shape=jax.ShapeDtypeStruct((B, NPAD), jnp.float32),
        cost_estimate=pl.CostEstimate(
            flops=int(flops),
            transcendentals=int(transcendentals),
            bytes_accessed=int(bytes_accessed),
        ),
        compiler_params=pltpu.CompilerParams(vmem_limit_bytes=4 * 1024 * 1024),
    )(*operands)

    return out_pad[:, :C]


# -----------------------------------------------------------------------------
# Main
# -----------------------------------------------------------------------------
if __name__ == "__main__":
    key = jax.random.PRNGKey(0)
    pkey, ikey = jax.random.split(key)

    params = init_params(pkey, CFG)

    B, S = 2, 8
    input_ids = jax.random.randint(ikey, (B, S), 0, CFG["vocab_size"], dtype=jnp.int32)
    # first example fully attended, second example has 2 padding positions
    attention_mask = jnp.array(
        [[1, 1, 1, 1, 1, 1, 1, 1],
         [1, 1, 1, 1, 1, 1, 0, 0]], dtype=jnp.int32)

    pred = my_model_forward(params, input_ids, attention_mask, CFG)
    pred = jax.block_until_ready(pred)
    assert pred.shape == (B, CFG["class_num"])
    print("KERNEL_OK")
</pallas_src>

<mosaic_0001>
module attributes {stable_mosaic.version = 11 : i64} {
  func.func @_bert_fused_kernel(%arg0: memref<16x32xf32, #tpu.memory_space<vmem>>, %arg1: memref<16x16xf32, #tpu.memory_space<vmem>>, %arg2: memref<1x32xf32, #tpu.memory_space<vmem>>, %arg3: memref<1x32xf32, #tpu.memory_space<vmem>>, %arg4: memref<2x32x96xbf16, #tpu.memory_space<vmem>>, %arg5: memref<2x1x96xf32, #tpu.memory_space<vmem>>, %arg6: memref<2x32x32xbf16, #tpu.memory_space<vmem>>, %arg7: memref<2x1x32xf32, #tpu.memory_space<vmem>>, %arg8: memref<2x1x32xf32, #tpu.memory_space<vmem>>, %arg9: memref<2x1x32xf32, #tpu.memory_space<vmem>>, %arg10: memref<2x32x64xbf16, #tpu.memory_space<vmem>>, %arg11: memref<2x1x64xf32, #tpu.memory_space<vmem>>, %arg12: memref<2x64x32xbf16, #tpu.memory_space<vmem>>, %arg13: memref<2x1x32xf32, #tpu.memory_space<vmem>>, %arg14: memref<2x1x32xf32, #tpu.memory_space<vmem>>, %arg15: memref<2x1x32xf32, #tpu.memory_space<vmem>>, %arg16: memref<32x32xbf16, #tpu.memory_space<vmem>>, %arg17: memref<1x32xf32, #tpu.memory_space<vmem>>, %arg18: memref<32x128xbf16, #tpu.memory_space<vmem>>, %arg19: memref<1x128xf32, #tpu.memory_space<vmem>>, %arg20: memref<2x128xf32, #tpu.memory_space<vmem>>) attributes {dimension_semantics = [], scalar_prefetch = 0 : i64, scratch_operands = 0 : i64, tpu.core_type = #tpu.core_type<tc>} {
    %0 = tpu.iota {dimensions = array<i32: 1>} : vector<1x32xi32>
    %c0_i32 = arith.constant 0 : i32
    %1 = vector.broadcast %c0_i32 : i32 to vector<1x32xi32>
    %2 = arith.cmpi sge, %0, %1 : vector<1x32xi32>
    %c16_i32 = arith.constant 16 : i32
    %3 = vector.broadcast %c16_i32 : i32 to vector<1x32xi32>
    %4 = arith.cmpi slt, %0, %3 : vector<1x32xi32>
    %5 = arith.andi %2, %4 : vector<1x32xi1>
    %cst = arith.constant 1.000000e+00 : f32
    %cst_0 = arith.constant 0.000000e+00 : f32
    %6 = vector.broadcast %cst : f32 to vector<1x32xf32>
    %7 = vector.broadcast %cst_0 : f32 to vector<1x32xf32>
    %8 = arith.select %5, %6, %7 : vector<1x32xi1>, vector<1x32xf32>
    %c16_i32_1 = arith.constant 16 : i32
    %9 = vector.broadcast %c16_i32_1 : i32 to vector<1x32xi32>
    %10 = arith.cmpi sge, %0, %9 : vector<1x32xi32>
    %c32_i32 = arith.constant 32 : i32
    %11 = vector.broadcast %c32_i32 : i32 to vector<1x32xi32>
    %12 = arith.cmpi slt, %0, %11 : vector<1x32xi32>
    %13 = arith.andi %10, %12 : vector<1x32xi1>
    %cst_2 = arith.constant 1.000000e+00 : f32
    %cst_3 = arith.constant 0.000000e+00 : f32
    %14 = vector.broadcast %cst_2 : f32 to vector<1x32xf32>
    %15 = vector.broadcast %cst_3 : f32 to vector<1x32xf32>
    %16 = arith.select %13, %14, %15 : vector<1x32xi1>, vector<1x32xf32>
    %c0 = arith.constant 0 : index
    %c0_4 = arith.constant 0 : index
    %17 = vector.load %arg1[%c0, %c0_4] : memref<16x16xf32, #tpu.memory_space<vmem>>, vector<16x16xf32>
    %c0_5 = arith.constant 0 : index
    %c0_6 = arith.constant 0 : index
    %18 = vector.load %arg0[%c0_5, %c0_6] : memref<16x32xf32, #tpu.memory_space<vmem>>, vector<16x32xf32>
    %c0_7 = arith.constant 0 : index
    %c0_8 = arith.constant 0 : index
    %19 = vector.load %arg2[%c0_7, %c0_8] : memref<1x32xf32, #tpu.memory_space<vmem>>, vector<1x32xf32>
    %c0_9 = arith.constant 0 : index
    %c0_10 = arith.constant 0 : index
    %20 = vector.load %arg3[%c0_9, %c0_10] : memref<1x32xf32, #tpu.memory_space<vmem>>, vector<1x32xf32>
    %cst_11 = arith.constant dense<0.000000e+00> : vector<16xf32>
    %21 = vector.multi_reduction <add>, %18, %cst_11 [1] : vector<16x32xf32> to vector<16xf32>
    %22 = vector.shape_cast %21 : vector<16xf32> to vector<16x1xf32>
    %cst_12 = arith.constant 3.200000e+01 : f32
    %23 = vector.broadcast %cst_12 : f32 to vector<16x1xf32>
    %24 = arith.divf %22, %23 : vector<16x1xf32>
    %25 = vector.broadcast %24 : vector<16x1xf32> to vector<16x32xf32>
    %26 = arith.subf %18, %25 : vector<16x32xf32>
    %27 = arith.mulf %26, %26 : vector<16x32xf32>
    %cst_13 = arith.constant dense<0.000000e+00> : vector<16xf32>
    %28 = vector.multi_reduction <add>, %27, %cst_13 [1] : vector<16x32xf32> to vector<16xf32>
    %29 = vector.shape_cast %28 : vector<16xf32> to vector<16x1xf32>
    %cst_14 = arith.constant 3.200000e+01 : f32
    %30 = vector.broadcast %cst_14 : f32 to vector<16x1xf32>
    %31 = arith.divf %29, %30 : vector<16x1xf32>
    %cst_15 = arith.constant 9.99999996E-13 : f32
    %32 = vector.broadcast %cst_15 : f32 to vector<16x1xf32>
    %33 = arith.addf %31, %32 : vector<16x1xf32>
    %34 = math.rsqrt %33 : vector<16x1xf32>
    %35 = vector.broadcast %24 : vector<16x1xf32> to vector<16x32xf32>
    %36 = arith.subf %18, %35 : vector<16x32xf32>
    %37 = vector.broadcast %34 : vector<16x1xf32> to vector<16x32xf32>
    %38 = arith.mulf %36, %37 : vector<16x32xf32>
    %39 = vector.broadcast %19 : vector<1x32xf32> to vector<16x32xf32>
    %40 = arith.mulf %38, %39 : vector<16x32xf32>
    %41 = vector.broadcast %20 : vector<1x32xf32> to vector<16x32xf32>
    %42 = arith.addf %40, %41 : vector<16x32xf32>
    %43 = arith.truncf %42 : vector<16x32xf32> to vector<16x32xbf16>
    %c0_16 = arith.constant 0 : index
    %c0_17 = arith.constant 0 : index
    %c0_18 = arith.constant 0 : index
    %44 = vector.load %arg4[%c0_16, %c0_17, %c0_18] : memref<2x32x96xbf16, #tpu.memory_space<vmem>>, vector<1x32x96xbf16>
    %45 = vector.shape_cast %44 : vector<1x32x96xbf16> to vector<32x96xbf16>
    %cst_19 = arith.constant dense<0.000000e+00> : vector<16x96xf32>
    %46 = tpu.matmul %43, %45, %cst_19 {dimension_numbers = #tpu.dot_dimension_numbers<[1], [0], [0], [1], [0, 0, 1, 1], [], []>} : vector<16x32xbf16>, vector<32x96xbf16>, vector<16x96xf32> -> vector<16x96xf32>
    %c0_20 = arith.constant 0 : index
    %c0_21 = arith.constant 0 : index
    %c0_22 = arith.constant 0 : index
    %47 = vector.load %arg5[%c0_20, %c0_21, %c0_22] : memref<2x1x96xf32, #tpu.memory_space<vmem>>, vector<1x1x96xf32>
    %48 = vector.shape_cast %47 : vector<1x1x96xf32> to vector<1x96xf32>
    %49 = vector.broadcast %48 : vector<1x96xf32> to vector<16x96xf32>
    %50 = arith.addf %46, %49 : vector<16x96xf32>
    %51 = vector.extract_strided_slice %50 {offsets = [0, 0], sizes = [16, 32], strides = [1, 1]} : vector<16x96xf32> to vector<16x32xf32>
    %52 = vector.extract_strided_slice %50 {offsets = [0, 32], sizes = [16, 32], strides = [1, 1]} : vector<16x96xf32> to vector<16x32xf32>
    %53 = arith.truncf %52 : vector<16x32xf32> to vector<16x32xbf16>
    %54 = vector.extract_strided_slice %50 {offsets = [0, 64], sizes = [16, 32], strides = [1, 1]} : vector<16x96xf32> to vector<16x32xf32>
    %55 = vector.broadcast %8 : vector<1x32xf32> to vector<16x32xf32>
    %56 = arith.mulf %51, %55 : vector<16x32xf32>
    %57 = arith.truncf %56 : vector<16x32xf32> to vector<16x32xbf16>
    %cst_23 = arith.constant dense<0.000000e+00> : vector<16x16xf32>
    %58 = tpu.matmul %57, %53, %cst_23 {dimension_numbers = #tpu.dot_dimension_numbers<[1], [1], [0], [0], [0, 0, 1, 0], [], []>} : vector<16x32xbf16>, vector<16x32xbf16>, vector<16x16xf32> -> vector<16x16xf32>
    %cst_24 = arith.constant 2.500000e-01 : f32
    %59 = vector.broadcast %cst_24 : f32 to vector<16x16xf32>
    %60 = arith.mulf %58, %59 : vector<16x16xf32>
    %61 = arith.addf %60, %17 : vector<16x16xf32>
    %cst_25 = arith.constant dense<0xFF800000> : vector<16xf32>
    %62 = vector.multi_reduction <maximumf>, %61, %cst_25 [1] : vector<16x16xf32> to vector<16xf32>
    %63 = vector.shape_cast %62 : vector<16xf32> to vector<16x1xf32>
    %64 = vector.broadcast %63 : vector<16x1xf32> to vector<16x16xf32>
    %65 = arith.subf %61, %64 : vector<16x16xf32>
    %66 = math.exp %65 : vector<16x16xf32>
    %cst_26 = arith.constant dense<0.000000e+00> : vector<16xf32>
    %67 = vector.multi_reduction <add>, %66, %cst_26 [1] : vector<16x16xf32> to vector<16xf32>
    %68 = vector.shape_cast %67 : vector<16xf32> to vector<16x1xf32>
    %69 = tpu.reciprocal %68 {approx = true} : vector<16x1xf32> -> vector<16x1xf32>
    %70 = vector.broadcast %69 : vector<16x1xf32> to vector<16x16xf32>
    %71 = arith.mulf %66, %70 : vector<16x16xf32>
    %72 = vector.broadcast %8 : vector<1x32xf32> to vector<16x32xf32>
    %73 = arith.mulf %54, %72 : vector<16x32xf32>
    %74 = arith.truncf %73 : vector<16x32xf32> to vector<16x32xbf16>
    %75 = arith.truncf %71 : vector<16x16xf32> to vector<16x16xbf16>
    %cst_27 = arith.constant dense<0.000000e+00> : vector<16x32xf32>
    %76 = tpu.matmul %75, %74, %cst_27 {dimension_numbers = #tpu.dot_dimension_numbers<[1], [0], [0], [1], [0, 0, 1, 1], [], []>} : vector<16x16xbf16>, vector<16x32xbf16>, vector<16x32xf32> -> vector<16x32xf32>
    %77 = vector.broadcast %16 : vector<1x32xf32> to vector<16x32xf32>
    %78 = arith.mulf %51, %77 : vector<16x32xf32>
    %79 = arith.truncf %78 : vector<16x32xf32> to vector<16x32xbf16>
    %cst_28 = arith.constant dense<0.000000e+00> : vector<16x16xf32>
    %80 = tpu.matmul %79, %53, %cst_28 {dimension_numbers = #tpu.dot_dimension_numbers<[1], [1], [0], [0], [0, 0, 1, 0], [], []>} : vector<16x32xbf16>, vector<16x32xbf16>, vector<16x16xf32> -> vector<16x16xf32>
    %cst_29 = arith.constant 2.500000e-01 : f32
    %81 = vector.broadcast %cst_29 : f32 to vector<16x16xf32>
    %82 = arith.mulf %80, %81 : vector<16x16xf32>
    %83 = arith.addf %82, %17 : vector<16x16xf32>
    %cst_30 = arith.constant dense<0xFF800000> : vector<16xf32>
    %84 = vector.multi_reduction <maximumf>, %83, %cst_30 [1] : vector<16x16xf32> to vector<16xf32>
    %85 = vector.shape_cast %84 : vector<16xf32> to vector<16x1xf32>
    %86 = vector.broadcast %85 : vector<16x1xf32> to vector<16x16xf32>
    %87 = arith.subf %83, %86 : vector<16x16xf32>
    %88 = math.exp %87 : vector<16x16xf32>
    %cst_31 = arith.constant dense<0.000000e+00> : vector<16xf32>
    %89 = vector.multi_reduction <add>, %88, %cst_31 [1] : vector<16x16xf32> to vector<16xf32>
    %90 = vector.shape_cast %89 : vector<16xf32> to vector<16x1xf32>
    %91 = tpu.reciprocal %90 {approx = true} : vector<16x1xf32> -> vector<16x1xf32>
    %92 = vector.broadcast %91 : vector<16x1xf32> to vector<16x16xf32>
    %93 = arith.mulf %88, %92 : vector<16x16xf32>
    %94 = vector.broadcast %16 : vector<1x32xf32> to vector<16x32xf32>
    %95 = arith.mulf %54, %94 : vector<16x32xf32>
    %96 = arith.truncf %95 : vector<16x32xf32> to vector<16x32xbf16>
    %97 = arith.truncf %93 : vector<16x16xf32> to vector<16x16xbf16>
    %cst_32 = arith.constant dense<0.000000e+00> : vector<16x32xf32>
    %98 = tpu.matmul %97, %96, %cst_32 {dimension_numbers = #tpu.dot_dimension_numbers<[1], [0], [0], [1], [0, 0, 1, 1], [], []>} : vector<16x16xbf16>, vector<16x32xbf16>, vector<16x32xf32> -> vector<16x32xf32>
    %99 = arith.addf %76, %98 : vector<16x32xf32>
    %100 = arith.truncf %99 : vector<16x32xf32> to vector<16x32xbf16>
    %c0_33 = arith.constant 0 : index
    %c0_34 = arith.constant 0 : index
    %c0_35 = arith.constant 0 : index
    %101 = vector.load %arg6[%c0_33, %c0_34, %c0_35] : memref<2x32x32xbf16, #tpu.memory_space<vmem>>, vector<1x32x32xbf16>
    %102 = vector.shape_cast %101 : vector<1x32x32xbf16> to vector<32x32xbf16>
    %cst_36 = arith.constant dense<0.000000e+00> : vector<16x32xf32>
    %103 = tpu.matmul %100, %102, %cst_36 {dimension_numbers = #tpu.dot_dimension_numbers<[1], [0], [0], [1], [0, 0, 1, 1], [], []>} : vector<16x32xbf16>, vector<32x32xbf16>, vector<16x32xf32> -> vector<16x32xf32>
    %c0_37 = arith.constant 0 : index
    %c0_38 = arith.constant 0 : index
    %c0_39 = arith.constant 0 : index
    %104 = vector.load %arg7[%c0_37, %c0_38, %c0_39] : memref<2x1x32xf32, #tpu.memory_space<vmem>>, vector<1x1x32xf32>
    %105 = vector.shape_cast %104 : vector<1x1x32xf32> to vector<1x32xf32>
    %106 = vector.broadcast %105 : vector<1x32xf32> to vector<16x32xf32>
    %107 = arith.addf %103, %106 : vector<16x32xf32>
    %108 = arith.addf %42, %107 : vector<16x32xf32>
    %c0_40 = arith.constant 0 : index
    %c0_41 = arith.constant 0 : index
    %c0_42 = arith.constant 0 : index
    %109 = vector.load %arg8[%c0_40, %c0_41, %c0_42] : memref<2x1x32xf32, #tpu.memory_space<vmem>>, vector<1x1x32xf32>
    %110 = vector.shape_cast %109 : vector<1x1x32xf32> to vector<1x32xf32>
    %c0_43 = arith.constant 0 : index
    %c0_44 = arith.constant 0 : index
    %c0_45 = arith.constant 0 : index
    %111 = vector.load %arg9[%c0_43, %c0_44, %c0_45] : memref<2x1x32xf32, #tpu.memory_space<vmem>>, vector<1x1x32xf32>
    %112 = vector.shape_cast %111 : vector<1x1x32xf32> to vector<1x32xf32>
    %cst_46 = arith.constant dense<0.000000e+00> : vector<16xf32>
    %113 = vector.multi_reduction <add>, %108, %cst_46 [1] : vector<16x32xf32> to vector<16xf32>
    %114 = vector.shape_cast %113 : vector<16xf32> to vector<16x1xf32>
    %cst_47 = arith.constant 3.200000e+01 : f32
    %115 = vector.broadcast %cst_47 : f32 to vector<16x1xf32>
    %116 = arith.divf %114, %115 : vector<16x1xf32>
    %117 = vector.broadcast %116 : vector<16x1xf32> to vector<16x32xf32>
    %118 = arith.subf %108, %117 : vector<16x32xf32>
    %119 = arith.mulf %118, %118 : vector<16x32xf32>
    %cst_48 = arith.constant dense<0.000000e+00> : vector<16xf32>
    %120 = vector.multi_reduction <add>, %119, %cst_48 [1] : vector<16x32xf32> to vector<16xf32>
    %121 = vector.shape_cast %120 : vector<16xf32> to vector<16x1xf32>
    %cst_49 = arith.constant 3.200000e+01 : f32
    %122 = vector.broadcast %cst_49 : f32 to vector<16x1xf32>
    %123 = arith.divf %121, %122 : vector<16x1xf32>
    %cst_50 = arith.constant 9.99999996E-13 : f32
    %124 = vector.broadcast %cst_50 : f32 to vector<16x1xf32>
    %125 = arith.addf %123, %124 : vector<16x1xf32>
    %126 = math.rsqrt %125 : vector<16x1xf32>
    %127 = vector.broadcast %116 : vector<16x1xf32> to vector<16x32xf32>
    %128 = arith.subf %108, %127 : vector<16x32xf32>
    %129 = vector.broadcast %126 : vector<16x1xf32> to vector<16x32xf32>
    %130 = arith.mulf %128, %129 : vector<16x32xf32>
    %131 = vector.broadcast %110 : vector<1x32xf32> to vector<16x32xf32>
    %132 = arith.mulf %130, %131 : vector<16x32xf32>
    %133 = vector.broadcast %112 : vector<1x32xf32> to vector<16x32xf32>
    %134 = arith.addf %132, %133 : vector<16x32xf32>
    %135 = arith.truncf %134 : vector<16x32xf32> to vector<16x32xbf16>
    %c0_51 = arith.constant 0 : index
    %c0_52 = arith.constant 0 : index
    %c0_53 = arith.constant 0 : index
    %136 = vector.load %arg10[%c0_51, %c0_52, %c0_53] : memref<2x32x64xbf16, #tpu.memory_space<vmem>>, vector<1x32x64xbf16>
    %137 = vector.shape_cast %136 : vector<1x32x64xbf16> to vector<32x64xbf16>
    %cst_54 = arith.constant dense<0.000000e+00> : vector<16x64xf32>
    %138 = tpu.matmul %135, %137, %cst_54 {dimension_numbers = #tpu.dot_dimension_numbers<[1], [0], [0], [1], [0, 0, 1, 1], [], []>} : vector<16x32xbf16>, vector<32x64xbf16>, vector<16x64xf32> -> vector<16x64xf32>
    %c0_55 = arith.constant 0 : index
    %c0_56 = arith.constant 0 : index
    %c0_57 = arith.constant 0 : index
    %139 = vector.load %arg11[%c0_55, %c0_56, %c0_57] : memref<2x1x64xf32, #tpu.memory_space<vmem>>, vector<1x1x64xf32>
    %140 = vector.shape_cast %139 : vector<1x1x64xf32> to vector<1x64xf32>
    %141 = vector.broadcast %140 : vector<1x64xf32> to vector<16x64xf32>
    %142 = arith.addf %138, %141 : vector<16x64xf32>
    %cst_58 = arith.constant 5.000000e-01 : f32
    %143 = vector.broadcast %cst_58 : f32 to vector<16x64xf32>
    %144 = arith.mulf %143, %142 : vector<16x64xf32>
    %cst_59 = arith.constant 4.471500e-02 : f32
    %145 = vector.broadcast %cst_59 : f32 to vector<16x64xf32>
    %146 = arith.mulf %145, %142 : vector<16x64xf32>
    %147 = arith.mulf %146, %142 : vector<16x64xf32>
    %148 = arith.mulf %147, %142 : vector<16x64xf32>
    %149 = arith.addf %142, %148 : vector<16x64xf32>
    %cst_60 = arith.constant 0.797884583 : f32
    %150 = vector.broadcast %cst_60 : f32 to vector<16x64xf32>
    %151 = arith.mulf %150, %149 : vector<16x64xf32>
    %152 = math.tanh %151 : vector<16x64xf32>
    %cst_61 = arith.constant 1.000000e+00 : f32
    %153 = vector.broadcast %cst_61 : f32 to vector<16x64xf32>
    %154 = arith.addf %153, %152 : vector<16x64xf32>
    %155 = arith.mulf %144, %154 : vector<16x64xf32>
    %156 = arith.truncf %155 : vector<16x64xf32> to vector<16x64xbf16>
    %c0_62 = arith.constant 0 : index
    %c0_63 = arith.constant 0 : index
    %c0_64 = arith.constant 0 : index
    %157 = vector.load %arg12[%c0_62, %c0_63, %c0_64] : memref<2x64x32xbf16, #tpu.memory_space<vmem>>, vector<1x64x32xbf16>
    %158 = vector.shape_cast %157 : vector<1x64x32xbf16> to vector<64x32xbf16>
    %cst_65 = arith.constant dense<0.000000e+00> : vector<16x32xf32>
    %159 = tpu.matmul %156, %158, %cst_65 {dimension_numbers = #tpu.dot_dimension_numbers<[1], [0], [0], [1], [0, 0, 1, 1], [], []>} : vector<16x64xbf16>, vector<64x32xbf16>, vector<16x32xf32> -> vector<16x32xf32>
    %c0_66 = arith.constant 0 : index
    %c0_67 = arith.constant 0 : index
    %c0_68 = arith.constant 0 : index
    %160 = vector.load %arg13[%c0_66, %c0_67, %c0_68] : memref<2x1x32xf32, #tpu.memory_space<vmem>>, vector<1x1x32xf32>
    %161 = vector.shape_cast %160 : vector<1x1x32xf32> to vector<1x32xf32>
    %162 = vector.broadcast %161 : vector<1x32xf32> to vector<16x32xf32>
    %163 = arith.addf %159, %162 : vector<16x32xf32>
    %164 = arith.addf %134, %163 : vector<16x32xf32>
    %c0_69 = arith.constant 0 : index
    %c0_70 = arith.constant 0 : index
    %c0_71 = arith.constant 0 : index
    %165 = vector.load %arg14[%c0_69, %c0_70, %c0_71] : memref<2x1x32xf32, #tpu.memory_space<vmem>>, vector<1x1x32xf32>
    %166 = vector.shape_cast %165 : vector<1x1x32xf32> to vector<1x32xf32>
    %c0_72 = arith.constant 0 : index
    %c0_73 = arith.constant 0 : index
    %c0_74 = arith.constant 0 : index
    %167 = vector.load %arg15[%c0_72, %c0_73, %c0_74] : memref<2x1x32xf32, #tpu.memory_space<vmem>>, vector<1x1x32xf32>
    %168 = vector.shape_cast %167 : vector<1x1x32xf32> to vector<1x32xf32>
    %cst_75 = arith.constant dense<0.000000e+00> : vector<16xf32>
    %169 = vector.multi_reduction <add>, %164, %cst_75 [1] : vector<16x32xf32> to vector<16xf32>
    %170 = vector.shape_cast %169 : vector<16xf32> to vector<16x1xf32>
    %cst_76 = arith.constant 3.200000e+01 : f32
    %171 = vector.broadcast %cst_76 : f32 to vector<16x1xf32>
    %172 = arith.divf %170, %171 : vector<16x1xf32>
    %173 = vector.broadcast %172 : vector<16x1xf32> to vector<16x32xf32>
    %174 = arith.subf %164, %173 : vector<16x32xf32>
    %175 = arith.mulf %174, %174 : vector<16x32xf32>
    %cst_77 = arith.constant dense<0.000000e+00> : vector<16xf32>
    %176 = vector.multi_reduction <add>, %175, %cst_77 [1] : vector<16x32xf32> to vector<16xf32>
    %177 = vector.shape_cast %176 : vector<16xf32> to vector<16x1xf32>
    %cst_78 = arith.constant 3.200000e+01 : f32
    %178 = vector.broadcast %cst_78 : f32 to vector<16x1xf32>
    %179 = arith.divf %177, %178 : vector<16x1xf32>
    %cst_79 = arith.constant 9.99999996E-13 : f32
    %180 = vector.broadcast %cst_79 : f32 to vector<16x1xf32>
    %181 = arith.addf %179, %180 : vector<16x1xf32>
    %182 = math.rsqrt %181 : vector<16x1xf32>
    %183 = vector.broadcast %172 : vector<16x1xf32> to vector<16x32xf32>
    %184 = arith.subf %164, %183 : vector<16x32xf32>
    %185 = vector.broadcast %182 : vector<16x1xf32> to vector<16x32xf32>
    %186 = arith.mulf %184, %185 : vector<16x32xf32>
    %187 = vector.broadcast %166 : vector<1x32xf32> to vector<16x32xf32>
    %188 = arith.mulf %186, %187 : vector<16x32xf32>
    %189 = vector.broadcast %168 : vector<1x32xf32> to vector<16x32xf32>
    %190 = arith.addf %188, %189 : vector<16x32xf32>
    %191 = arith.truncf %190 : vector<16x32xf32> to vector<16x32xbf16>
    %c1 = arith.constant 1 : index
    %c0_80 = arith.constant 0 : index
    %c0_81 = arith.constant 0 : index
    %192 = vector.load %arg4[%c1, %c0_80, %c0_81] : memref<2x32x96xbf16, #tpu.memory_space<vmem>>, vector<1x32x96xbf16>
    %193 = vector.shape_cast %192 : vector<1x32x96xbf16> to vector<32x96xbf16>
    %cst_82 = arith.constant dense<0.000000e+00> : vector<16x96xf32>
    %194 = tpu.matmul %191, %193, %cst_82 {dimension_numbers = #tpu.dot_dimension_numbers<[1], [0], [0], [1], [0, 0, 1, 1], [], []>} : vector<16x32xbf16>, vector<32x96xbf16>, vector<16x96xf32> -> vector<16x96xf32>
    %c1_83 = arith.constant 1 : index
    %c0_84 = arith.constant 0 : index
    %c0_85 = arith.constant 0 : index
    %195 = vector.load %arg5[%c1_83, %c0_84, %c0_85] : memref<2x1x96xf32, #tpu.memory_space<vmem>>, vector<1x1x96xf32>
    %196 = vector.shape_cast %195 : vector<1x1x96xf32> to vector<1x96xf32>
    %197 = vector.broadcast %196 : vector<1x96xf32> to vector<16x96xf32>
    %198 = arith.addf %194, %197 : vector<16x96xf32>
    %199 = vector.extract_strided_slice %198 {offsets = [0, 0], sizes = [16, 32], strides = [1, 1]} : vector<16x96xf32> to vector<16x32xf32>
    %200 = vector.extract_strided_slice %198 {offsets = [0, 32], sizes = [16, 32], strides = [1, 1]} : vector<16x96xf32> to vector<16x32xf32>
    %201 = arith.truncf %200 : vector<16x32xf32> to vector<16x32xbf16>
    %202 = vector.extract_strided_slice %198 {offsets = [0, 64], sizes = [16, 32], strides = [1, 1]} : vector<16x96xf32> to vector<16x32xf32>
    %203 = vector.broadcast %8 : vector<1x32xf32> to vector<16x32xf32>
    %204 = arith.mulf %199, %203 : vector<16x32xf32>
    %205 = arith.truncf %204 : vector<16x32xf32> to vector<16x32xbf16>
    %cst_86 = arith.constant dense<0.000000e+00> : vector<16x16xf32>
    %206 = tpu.matmul %205, %201, %cst_86 {dimension_numbers = #tpu.dot_dimension_numbers<[1], [1], [0], [0], [0, 0, 1, 0], [], []>} : vector<16x32xbf16>, vector<16x32xbf16>, vector<16x16xf32> -> vector<16x16xf32>
    %cst_87 = arith.constant 2.500000e-01 : f32
    %207 = vector.broadcast %cst_87 : f32 to vector<16x16xf32>
    %208 = arith.mulf %206, %207 : vector<16x16xf32>
    %209 = arith.addf %208, %17 : vector<16x16xf32>
    %cst_88 = arith.constant dense<0xFF800000> : vector<16xf32>
    %210 = vector.multi_reduction <maximumf>, %209, %cst_88 [1] : vector<16x16xf32> to vector<16xf32>
    %211 = vector.shape_cast %210 : vector<16xf32> to vector<16x1xf32>
    %212 = vector.broadcast %211 : vector<16x1xf32> to vector<16x16xf32>
    %213 = arith.subf %209, %212 : vector<16x16xf32>
    %214 = math.exp %213 : vector<16x16xf32>
    %cst_89 = arith.constant dense<0.000000e+00> : vector<16xf32>
    %215 = vector.multi_reduction <add>, %214, %cst_89 [1] : vector<16x16xf32> to vector<16xf32>
    %216 = vector.shape_cast %215 : vector<16xf32> to vector<16x1xf32>
    %217 = tpu.reciprocal %216 {approx = true} : vector<16x1xf32> -> vector<16x1xf32>
    %218 = vector.broadcast %217 : vector<16x1xf32> to vector<16x16xf32>
    %219 = arith.mulf %214, %218 : vector<16x16xf32>
    %220 = vector.broadcast %8 : vector<1x32xf32> to vector<16x32xf32>
    %221 = arith.mulf %202, %220 : vector<16x32xf32>
    %222 = arith.truncf %221 : vector<16x32xf32> to vector<16x32xbf16>
    %223 = arith.truncf %219 : vector<16x16xf32> to vector<16x16xbf16>
    %cst_90 = arith.constant dense<0.000000e+00> : vector<16x32xf32>
    %224 = tpu.matmul %223, %222, %cst_90 {dimension_numbers = #tpu.dot_dimension_numbers<[1], [0], [0], [1], [0, 0, 1, 1], [], []>} : vector<16x16xbf16>, vector<16x32xbf16>, vector<16x32xf32> -> vector<16x32xf32>
    %225 = vector.broadcast %16 : vector<1x32xf32> to vector<16x32xf32>
    %226 = arith.mulf %199, %225 : vector<16x32xf32>
    %227 = arith.truncf %226 : vector<16x32xf32> to vector<16x32xbf16>
    %cst_91 = arith.constant dense<0.000000e+00> : vector<16x16xf32>
    %228 = tpu.matmul %227, %201, %cst_91 {dimension_numbers = #tpu.dot_dimension_numbers<[1], [1], [0], [0], [0, 0, 1, 0], [], []>} : vector<16x32xbf16>, vector<16x32xbf16>, vector<16x16xf32> -> vector<16x16xf32>
    %cst_92 = arith.constant 2.500000e-01 : f32
    %229 = vector.broadcast %cst_92 : f32 to vector<16x16xf32>
    %230 = arith.mulf %228, %229 : vector<16x16xf32>
    %231 = arith.addf %230, %17 : vector<16x16xf32>
    %cst_93 = arith.constant dense<0xFF800000> : vector<16xf32>
    %232 = vector.multi_reduction <maximumf>, %231, %cst_93 [1] : vector<16x16xf32> to vector<16xf32>
    %233 = vector.shape_cast %232 : vector<16xf32> to vector<16x1xf32>
    %234 = vector.broadcast %233 : vector<16x1xf32> to vector<16x16xf32>
    %235 = arith.subf %231, %234 : vector<16x16xf32>
    %236 = math.exp %235 : vector<16x16xf32>
    %cst_94 = arith.constant dense<0.000000e+00> : vector<16xf32>
    %237 = vector.multi_reduction <add>, %236, %cst_94 [1] : vector<16x16xf32> to vector<16xf32>
    %238 = vector.shape_cast %237 : vector<16xf32> to vector<16x1xf32>
    %239 = tpu.reciprocal %238 {approx = true} : vector<16x1xf32> -> vector<16x1xf32>
    %240 = vector.broadcast %239 : vector<16x1xf32> to vector<16x16xf32>
    %241 = arith.mulf %236, %240 : vector<16x16xf32>
    %242 = vector.broadcast %16 : vector<1x32xf32> to vector<16x32xf32>
    %243 = arith.mulf %202, %242 : vector<16x32xf32>
    %244 = arith.truncf %243 : vector<16x32xf32> to vector<16x32xbf16>
    %245 = arith.truncf %241 : vector<16x16xf32> to vector<16x16xbf16>
    %cst_95 = arith.constant dense<0.000000e+00> : vector<16x32xf32>
    %246 = tpu.matmul %245, %244, %cst_95 {dimension_numbers = #tpu.dot_dimension_numbers<[1], [0], [0], [1], [0, 0, 1, 1], [], []>} : vector<16x16xbf16>, vector<16x32xbf16>, vector<16x32xf32> -> vector<16x32xf32>
    %247 = arith.addf %224, %246 : vector<16x32xf32>
    %248 = arith.truncf %247 : vector<16x32xf32> to vector<16x32xbf16>
    %c1_96 = arith.constant 1 : index
    %c0_97 = arith.constant 0 : index
    %c0_98 = arith.constant 0 : index
    %249 = vector.load %arg6[%c1_96, %c0_97, %c0_98] : memref<2x32x32xbf16, #tpu.memory_space<vmem>>, vector<1x32x32xbf16>
    %250 = vector.shape_cast %249 : vector<1x32x32xbf16> to vector<32x32xbf16>
    %cst_99 = arith.constant dense<0.000000e+00> : vector<16x32xf32>
    %251 = tpu.matmul %248, %250, %cst_99 {dimension_numbers = #tpu.dot_dimension_numbers<[1], [0], [0], [1], [0, 0, 1, 1], [], []>} : vector<16x32xbf16>, vector<32x32xbf16>, vector<16x32xf32> -> vector<16x32xf32>
    %c1_100 = arith.constant 1 : index
    %c0_101 = arith.constant 0 : index
    %c0_102 = arith.constant 0 : index
    %252 = vector.load %arg7[%c1_100, %c0_101, %c0_102] : memref<2x1x32xf32, #tpu.memory_space<vmem>>, vector<1x1x32xf32>
    %253 = vector.shape_cast %252 : vector<1x1x32xf32> to vector<1x32xf32>
    %254 = vector.broadcast %253 : vector<1x32xf32> to vector<16x32xf32>
    %255 = arith.addf %251, %254 : vector<16x32xf32>
    %256 = arith.addf %190, %255 : vector<16x32xf32>
    %c1_103 = arith.constant 1 : index
    %c0_104 = arith.constant 0 : index
    %c0_105 = arith.constant 0 : index
    %257 = vector.load %arg8[%c1_103, %c0_104, %c0_105] : memref<2x1x32xf32, #tpu.memory_space<vmem>>, vector<1x1x32xf32>
    %258 = vector.shape_cast %257 : vector<1x1x32xf32> to vector<1x32xf32>
    %c1_106 = arith.constant 1 : index
    %c0_107 = arith.constant 0 : index
    %c0_108 = arith.constant 0 : index
    %259 = vector.load %arg9[%c1_106, %c0_107, %c0_108] : memref<2x1x32xf32, #tpu.memory_space<vmem>>, vector<1x1x32xf32>
    %260 = vector.shape_cast %259 : vector<1x1x32xf32> to vector<1x32xf32>
    %cst_109 = arith.constant dense<0.000000e+00> : vector<16xf32>
    %261 = vector.multi_reduction <add>, %256, %cst_109 [1] : vector<16x32xf32> to vector<16xf32>
    %262 = vector.shape_cast %261 : vector<16xf32> to vector<16x1xf32>
    %cst_110 = arith.constant 3.200000e+01 : f32
    %263 = vector.broadcast %cst_110 : f32 to vector<16x1xf32>
    %264 = arith.divf %262, %263 : vector<16x1xf32>
    %265 = vector.broadcast %264 : vector<16x1xf32> to vector<16x32xf32>
    %266 = arith.subf %256, %265 : vector<16x32xf32>
    %267 = arith.mulf %266, %266 : vector<16x32xf32>
    %cst_111 = arith.constant dense<0.000000e+00> : vector<16xf32>
    %268 = vector.multi_reduction <add>, %267, %cst_111 [1] : vector<16x32xf32> to vector<16xf32>
    %269 = vector.shape_cast %268 : vector<16xf32> to vector<16x1xf32>
    %cst_112 = arith.constant 3.200000e+01 : f32
    %270 = vector.broadcast %cst_112 : f32 to vector<16x1xf32>
    %271 = arith.divf %269, %270 : vector<16x1xf32>
    %cst_113 = arith.constant 9.99999996E-13 : f32
    %272 = vector.broadcast %cst_113 : f32 to vector<16x1xf32>
    %273 = arith.addf %271, %272 : vector<16x1xf32>
    %274 = math.rsqrt %273 : vector<16x1xf32>
    %275 = vector.broadcast %264 : vector<16x1xf32> to vector<16x32xf32>
    %276 = arith.subf %256, %275 : vector<16x32xf32>
    %277 = vector.broadcast %274 : vector<16x1xf32> to vector<16x32xf32>
    %278 = arith.mulf %276, %277 : vector<16x32xf32>
    %279 = vector.broadcast %258 : vector<1x32xf32> to vector<16x32xf32>
    %280 = arith.mulf %278, %279 : vector<16x32xf32>
    %281 = vector.broadcast %260 : vector<1x32xf32> to vector<16x32xf32>
    %282 = arith.addf %280, %281 : vector<16x32xf32>
    %283 = arith.truncf %282 : vector<16x32xf32> to vector<16x32xbf16>
    %c1_114 = arith.constant 1 : index
    %c0_115 = arith.constant 0 : index
    %c0_116 = arith.constant 0 : index
    %284 = vector.load %arg10[%c1_114, %c0_115, %c0_116] : memref<2x32x64xbf16, #tpu.memory_space<vmem>>, vector<1x32x64xbf16>
    %285 = vector.shape_cast %284 : vector<1x32x64xbf16> to vector<32x64xbf16>
    %cst_117 = arith.constant dense<0.000000e+00> : vector<16x64xf32>
    %286 = tpu.matmul %283, %285, %cst_117 {dimension_numbers = #tpu.dot_dimension_numbers<[1], [0], [0], [1], [0, 0, 1, 1], [], []>} : vector<16x32xbf16>, vector<32x64xbf16>, vector<16x64xf32> -> vector<16x64xf32>
    %c1_118 = arith.constant 1 : index
    %c0_119 = arith.constant 0 : index
    %c0_120 = arith.constant 0 : index
    %287 = vector.load %arg11[%c1_118, %c0_119, %c0_120] : memref<2x1x64xf32, #tpu.memory_space<vmem>>, vector<1x1x64xf32>
    %288 = vector.shape_cast %287 : vector<1x1x64xf32> to vector<1x64xf32>
    %289 = vector.broadcast %288 : vector<1x64xf32> to vector<16x64xf32>
    %290 = arith.addf %286, %289 : vector<16x64xf32>
    %cst_121 = arith.constant 5.000000e-01 : f32
    %291 = vector.broadcast %cst_121 : f32 to vector<16x64xf32>
    %292 = arith.mulf %291, %290 : vector<16x64xf32>
    %cst_122 = arith.constant 4.471500e-02 : f32
    %293 = vector.broadcast %cst_122 : f32 to vector<16x64xf32>
    %294 = arith.mulf %293, %290 : vector<16x64xf32>
    %295 = arith.mulf %294, %290 : vector<16x64xf32>
    %296 = arith.mulf %295, %290 : vector<16x64xf32>
    %297 = arith.addf %290, %296 : vector<16x64xf32>
    %cst_123 = arith.constant 0.797884583 : f32
    %298 = vector.broadcast %cst_123 : f32 to vector<16x64xf32>
    %299 = arith.mulf %298, %297 : vector<16x64xf32>
    %300 = math.tanh %299 : vector<16x64xf32>
    %cst_124 = arith.constant 1.000000e+00 : f32
    %301 = vector.broadcast %cst_124 : f32 to vector<16x64xf32>
    %302 = arith.addf %301, %300 : vector<16x64xf32>
    %303 = arith.mulf %292, %302 : vector<16x64xf32>
    %304 = arith.truncf %303 : vector<16x64xf32> to vector<16x64xbf16>
    %c1_125 = arith.constant 1 : index
    %c0_126 = arith.constant 0 : index
    %c0_127 = arith.constant 0 : index
    %305 = vector.load %arg12[%c1_125, %c0_126, %c0_127] : memref<2x64x32xbf16, #tpu.memory_space<vmem>>, vector<1x64x32xbf16>
    %306 = vector.shape_cast %305 : vector<1x64x32xbf16> to vector<64x32xbf16>
    %cst_128 = arith.constant dense<0.000000e+00> : vector<16x32xf32>
    %307 = tpu.matmul %304, %306, %cst_128 {dimension_numbers = #tpu.dot_dimension_numbers<[1], [0], [0], [1], [0, 0, 1, 1], [], []>} : vector<16x64xbf16>, vector<64x32xbf16>, vector<16x32xf32> -> vector<16x32xf32>
    %c1_129 = arith.constant 1 : index
    %c0_130 = arith.constant 0 : index
    %c0_131 = arith.constant 0 : index
    %308 = vector.load %arg13[%c1_129, %c0_130, %c0_131] : memref<2x1x32xf32, #tpu.memory_space<vmem>>, vector<1x1x32xf32>
    %309 = vector.shape_cast %308 : vector<1x1x32xf32> to vector<1x32xf32>
    %310 = vector.broadcast %309 : vector<1x32xf32> to vector<16x32xf32>
    %311 = arith.addf %307, %310 : vector<16x32xf32>
    %312 = arith.addf %282, %311 : vector<16x32xf32>
    %c1_132 = arith.constant 1 : index
    %c0_133 = arith.constant 0 : index
    %c0_134 = arith.constant 0 : index
    %313 = vector.load %arg14[%c1_132, %c0_133, %c0_134] : memref<2x1x32xf32, #tpu.memory_space<vmem>>, vector<1x1x32xf32>
    %314 = vector.shape_cast %313 : vector<1x1x32xf32> to vector<1x32xf32>
    %c1_135 = arith.constant 1 : index
    %c0_136 = arith.constant 0 : index
    %c0_137 = arith.constant 0 : index
    %315 = vector.load %arg15[%c1_135, %c0_136, %c0_137] : memref<2x1x32xf32, #tpu.memory_space<vmem>>, vector<1x1x32xf32>
    %316 = vector.shape_cast %315 : vector<1x1x32xf32> to vector<1x32xf32>
    %cst_138 = arith.constant dense<0.000000e+00> : vector<16xf32>
    %317 = vector.multi_reduction <add>, %312, %cst_138 [1] : vector<16x32xf32> to vector<16xf32>
    %318 = vector.shape_cast %317 : vector<16xf32> to vector<16x1xf32>
    %cst_139 = arith.constant 3.200000e+01 : f32
    %319 = vector.broadcast %cst_139 : f32 to vector<16x1xf32>
    %320 = arith.divf %318, %319 : vector<16x1xf32>
    %321 = vector.broadcast %320 : vector<16x1xf32> to vector<16x32xf32>
    %322 = arith.subf %312, %321 : vector<16x32xf32>
    %323 = arith.mulf %322, %322 : vector<16x32xf32>
    %cst_140 = arith.constant dense<0.000000e+00> : vector<16xf32>
    %324 = vector.multi_reduction <add>, %323, %cst_140 [1] : vector<16x32xf32> to vector<16xf32>
    %325 = vector.shape_cast %324 : vector<16xf32> to vector<16x1xf32>
    %cst_141 = arith.constant 3.200000e+01 : f32
    %326 = vector.broadcast %cst_141 : f32 to vector<16x1xf32>
    %327 = arith.divf %325, %326 : vector<16x1xf32>
    %cst_142 = arith.constant 9.99999996E-13 : f32
    %328 = vector.broadcast %cst_142 : f32 to vector<16x1xf32>
    %329 = arith.addf %327, %328 : vector<16x1xf32>
    %330 = math.rsqrt %329 : vector<16x1xf32>
    %331 = vector.broadcast %320 : vector<16x1xf32> to vector<16x32xf32>
    %332 = arith.subf %312, %331 : vector<16x32xf32>
    %333 = vector.broadcast %330 : vector<16x1xf32> to vector<16x32xf32>
    %334 = arith.mulf %332, %333 : vector<16x32xf32>
    %335 = vector.broadcast %314 : vector<1x32xf32> to vector<16x32xf32>
    %336 = arith.mulf %334, %335 : vector<16x32xf32>
    %337 = vector.broadcast %316 : vector<1x32xf32> to vector<16x32xf32>
    %338 = arith.addf %336, %337 : vector<16x32xf32>
    %339 = vector.extract_strided_slice %338 {offsets = [0, 0], sizes = [1, 32], strides = [1, 1]} : vector<16x32xf32> to vector<1x32xf32>
    %340 = vector.extract_strided_slice %338 {offsets = [8, 0], sizes = [1, 32], strides = [1, 1]} : vector<16x32xf32> to vector<1x32xf32>
    %341 = tpu.concatenate %339, %340 in 0 : vector<1x32xf32>, vector<1x32xf32> -> vector<2x32xf32>
    %342 = arith.truncf %341 : vector<2x32xf32> to vector<2x32xbf16>
    %c0_143 = arith.constant 0 : index
    %c0_144 = arith.constant 0 : index
    %343 = vector.load %arg16[%c0_143, %c0_144] : memref<32x32xbf16, #tpu.memory_space<vmem>>, vector<32x32xbf16>
    %cst_145 = arith.constant dense<0.000000e+00> : vector<2x32xf32>
    %344 = tpu.matmul %342, %343, %cst_145 {dimension_numbers = #tpu.dot_dimension_numbers<[1], [0], [0], [1], [0, 0, 1, 1], [], []>} : vector<2x32xbf16>, vector<32x32xbf16>, vector<2x32xf32> -> vector<2x32xf32>
    %c0_146 = arith.constant 0 : index
    %c0_147 = arith.constant 0 : index
    %345 = vector.load %arg17[%c0_146, %c0_147] : memref<1x32xf32, #tpu.memory_space<vmem>>, vector<1x32xf32>
    %346 = vector.broadcast %345 : vector<1x32xf32> to vector<2x32xf32>
    %347 = arith.addf %344, %346 : vector<2x32xf32>
    %348 = math.tanh %347 : vector<2x32xf32>
    %349 = arith.truncf %348 : vector<2x32xf32> to vector<2x32xbf16>
    %c0_148 = arith.constant 0 : index
    %c0_149 = arith.constant 0 : index
    %350 = vector.load %arg18[%c0_148, %c0_149] : memref<32x128xbf16, #tpu.memory_space<vmem>>, vector<32x128xbf16>
    %cst_150 = arith.constant dense<0.000000e+00> : vector<2x128xf32>
    %351 = tpu.matmul %349, %350, %cst_150 {dimension_numbers = #tpu.dot_dimension_numbers<[1], [0], [0], [1], [0, 0, 1, 1], [], []>} : vector<2x32xbf16>, vector<32x128xbf16>, vector<2x128xf32> -> vector<2x128xf32>
    %c0_151 = arith.constant 0 : index
    %c0_152 = arith.constant 0 : index
    %352 = vector.load %arg19[%c0_151, %c0_152] : memref<1x128xf32, #tpu.memory_space<vmem>>, vector<1x128xf32>
    %353 = vector.broadcast %352 : vector<1x128xf32> to vector<2x128xf32>
    %354 = arith.addf %351, %353 : vector<2x128xf32>
    %c0_153 = arith.constant 0 : index
    %c0_154 = arith.constant 0 : index
    %355 = vector.load %arg20[%c0_153, %c0_154] : memref<2x128xf32, #tpu.memory_space<vmem>>, vector<2x128xf32>
    tpu.vector_store %arg20[%c0_153, %c0_154], %354 {strides = array<i32>} : memref<2x128xf32, #tpu.memory_space<vmem>>, vector<2x128xf32>,
    return
  }
}

</mosaic_0001>

<bundles_post_ra>
// kernel: tpu_custom_call.1
= control target key start
LH: loop header
LB: loop body
LE: loop exit
PB: predicated region body
PF: predicated region fallthrough
CT: control target
= control target key end

     0   :  { %s3155_s0 = inlined_call_operand.hbm [shape: f32[16,32], index: 0, kind: input, shape index: {}]   ;;  %s3156_s1 = inlined_call_operand.hbm [shape: f32[16,16], index: 1, kind: input, shape index: {}]   ;;  %s3157_s2 = inlined_call_operand.hbm [shape: f32[1,32], index: 2, kind: input, shape index: {}]   ;;  %s3158_s3 = inlined_call_operand.hbm [shape: f32[1,32], index: 3, kind: input, shape index: {}]   ;;  %s3159_s4 = inlined_call_operand.vmem [shape: bf16[2,32,96], index: 4, kind: input, shape index: {}]   ;;  %s3160_s5 = inlined_call_operand.hbm [shape: f32[2,1,96], index: 5, kind: input, shape index: {}]   ;;  %s3161_s6 = inlined_call_operand.vmem [shape: bf16[2,32,32], index: 6, kind: input, shape index: {}]   ;;  %s3162_s7 = inlined_call_operand.hbm [shape: f32[2,1,32], index: 7, kind: input, shape index: {}]   ;;  %s3163_s8 = inlined_call_operand.hbm [shape: f32[2,1,32], index: 8, kind: input, shape index: {}]   ;;  %s3164_s9 = inlined_call_operand.hbm [shape: f32[2,1,32], index: 9, kind: input, shape index: {}]   ;;  %s3165_s10 = inlined_call_operand.vmem [shape: bf16[2,32,64], index: 10, kind: input, shape index: {}]   ;;  %s3166_s11 = inlined_call_operand.hbm [shape: f32[2,1,64], index: 11, kind: input, shape index: {}]   ;;  %s3167_s12 = inlined_call_operand.vmem [shape: bf16[2,64,32], index: 12, kind: input, shape index: {}]   ;;  %s3168_s13 = inlined_call_operand.hbm [shape: f32[2,1,32], index: 13, kind: input, shape index: {}]   ;;  %s3169_s14 = inlined_call_operand.hbm [shape: f32[2,1,32], index: 14, kind: input, shape index: {}]   ;;  %s3170_s15 = inlined_call_operand.hbm [shape: f32[2,1,32], index: 15, kind: input, shape index: {}]   ;;  %s3171_s16 = inlined_call_operand.vmem [shape: bf16[32,32], index: 16, kind: input, shape index: {}]   ;;  %s3172_s17 = inlined_call_operand.hbm [shape: f32[1,32], index: 17, kind: input, shape index: {}]   ;;  %s3173_s18 = inlined_call_operand.vmem [shape: bf16[32,128], index: 18, kind: input, shape index: {}]   ;;  %s3174_s19 = inlined_call_operand.vmem [shape: f32[1,128], index: 19, kind: input, shape index: {}]   ;;  %s3175_s20 = inlined_call_operand.hbm [shape: f32[2,128], index: 20, kind: output, shape index: {}]  }
   0x1   :  { %3183 = sst [smem:[#allocation32_spill]] %s3155_s0 }
   0x2   :  { %3184 = sst [smem:[#allocation33_spill]] %s3156_s1 }
   0x3   :  { %3185 = sst [smem:[#allocation34_spill]] %s3157_s2 }
   0x4   :  { %3186 = sst [smem:[#allocation35_spill]] %s3158_s3 }
   0x5   :  { %3187 = sst [smem:[#allocation36_spill]] %s3159_s4 }
   0x6   :  { %25 = vsyncpa [#allocation3], 0 }
   0x7   :  { %26 = vsyncpa [#allocation6], 0 }
   0x8   :  { %27 = vsyncpa [#allocation9], 0 }
   0x9   :  { %28 = vsyncpa [#allocation12], 0 }
   0xa   :  { %29 = vsyncpa [#allocation15], 0 }
   0xb   :  { %30 = vsyncpa [#allocation18], 0 }
   0xc   :  { %31 = vsyncpa [#allocation21], 0 }
   0xd   :  { %32 = vsyncpa [#allocation4], 0  ;;  %s2499_s1 = smov [#allocation5]   ;;  %s2500_s23 = smov [#allocation8]  }
   0xe   :  { %s50_s22 = sshll.u32 %s2499_s1, 4  ;;  %s73_s24 = sshll.u32 %s2500_s23, 4  ;;  %s51_s22 = int_to_ptr.vmem [resolvable:$true] %s50_s22  ;;  %s2626_s24 = int_to_ptr.vmem [resolvable:$true] %s73_s24 }
   0xf   :  { %s3188_s3 = sld [smem:[#allocation33_spill]] }
  0x15   :  { %s2175_s26 = scalar_lea.hbm %s3188_s3, 256 }
  0x16   :  { %p2176_p0 = scmp.ne.s32.totalorder %s3188_s3, %s2175_s26  ;;  %p2179_p1 = scmp.lt.u32.totalorder %s2175_s26, %s3188_s3 }
  0x18   :  { %p2181_p2 = pnand %p2179_p1, %p2176_p0 }
  0x1a   :  { %2184 = shalt.err (!%p2181_p2)
}
  0x1b   :  { %s2185_s30 = scalar_lea.vmem %s51_s22, 256  ;;  %p2190_p4 = scmp.lt.s32.totalorder %s51_s22, %s51_s22 }
  0x1c   :  { %p2186_p3 = scmp.ne.s32.totalorder %s51_s22, %s2185_s30  ;;  %p2191_p5 = scmp.lt.s32.totalorder %s2185_s30, %s2185_s30 }
  0x1e   :  { %p2192_p6 = por %p2191_p5, %p2190_p4 }
  0x20   :  { %p2193_p7 = pnand %p2192_p6, %p2186_p3 }
  0x22   :  { %2196 = shalt.err (!%p2193_p7)
}
  0x23   :  { %s3181_s0 = smov 128   ;;  %s3182_s21 = smov 8  }
  0x24   :  { %56 = dma.hbm_to_vmem [thread:$0]  %s3188_s3, 256, %s51_s22, [#allocation6], %s3181_s0, %s3181_s0, %s3182_s21  }
  0x25   :  { %s3189_s26 = sld [smem:[#allocation35_spill]] }
  0x2b   :  { %s2197_s27 = scalar_lea.hbm %s3189_s26, 16 }
  0x2c   :  { %p2198_p8 = scmp.ne.s32.totalorder %s3189_s26, %s2197_s27  ;;  %p2201_p9 = scmp.lt.u32.totalorder %s2197_s27, %s3189_s26 }
  0x2e   :  { %p2203_p10 = pnand %p2201_p9, %p2198_p8 }
  0x30   :  { %2206 = shalt.err (!%p2203_p10)
}
  0x31   :  { %s2207_s1 = scalar_lea.vmem %s2626_s24, 16  ;;  %s2211_s22 = scalar_lea.vmem %s2626_s24, 32 }
  0x32   :  { %p2208_p11 = scmp.ne.s32.totalorder %s2626_s24, %s2207_s1  ;;  %p2212_p12 = scmp.lt.s32.totalorder %s2626_s24, %s2626_s24 }
  0x33   :  { %p2213_p13 = scmp.lt.s32.totalorder %s2211_s22, %s2207_s1 }
  0x35   :  { %p2214_p0 = por %p2213_p13, %p2212_p12 }
  0x37   :  { %p2215_p1 = pnand %p2214_p0, %p2208_p11 }
  0x39   :  { %2218 = shalt.err (!%p2215_p1)
}
  0x3a   :  { %76 = dma.hbm_to_vmem [thread:$0]  %s3189_s26, 16, %s2626_s24, [#allocation9]  }
  0x3b   :  { %s2503_s2 = smov [#allocation11]   ;;  %s2504_s27 = smov [#allocation14]  }
  0x3c   :  { %s98_s25 = sshll.u32 %s2503_s2, 4  ;;  %s122_s28 = sshll.u32 %s2504_s27, 4  ;;  %s99_s25 = int_to_ptr.vmem [resolvable:$true] %s98_s25  ;;  %s2661_s28 = int_to_ptr.vmem [resolvable:$true] %s122_s28 }
  0x3d   :  { %s2219_s30 = scalar_lea.hbm %s3162_s7, 32 }
  0x3e   :  { %p2220_p2 = scmp.ne.s32.totalorder %s3162_s7, %s2219_s30  ;;  %p2223_p3 = scmp.lt.u32.totalorder %s2219_s30, %s3162_s7 }
  0x40   :  { %p2225_p4 = pnand %p2223_p3, %p2220_p2 }
  0x42   :  { %2228 = shalt.err (!%p2225_p4)
}
  0x43   :  { %s2229_s24 = scalar_lea.vmem %s99_s25, 32  ;;  %p2234_p6 = scmp.lt.s32.totalorder %s99_s25, %s99_s25 }
  0x44   :  { %p2230_p5 = scmp.ne.s32.totalorder %s99_s25, %s2229_s24  ;;  %p2235_p7 = scmp.lt.s32.totalorder %s2229_s24, %s2229_s24 }
  0x46   :  { %p2236_p8 = por %p2235_p7, %p2234_p6 }
  0x48   :  { %p2237_p9 = pnand %p2236_p8, %p2230_p5 }
  0x4a   :  { %2240 = shalt.err (!%p2237_p9)
}
  0x4b   :  { %s2505_s26 = smov 16   ;;  %s2506_s3 = smov 1  }
  0x4c   :  { %104 = dma.hbm_to_vmem [thread:$0]  %s3162_s7, 32, %s99_s25, [#allocation12], %s2505_s26, %s2505_s26, %s2506_s3  }
  0x4d   :  { %s2241_s27 = scalar_lea.hbm %s3164_s9, 32 }
  0x4e   :  { %p2242_p10 = scmp.ne.s32.totalorder %s3164_s9, %s2241_s27  ;;  %p2245_p11 = scmp.lt.u32.totalorder %s2241_s27, %s3164_s9 }
  0x50   :  { %p2247_p12 = pnand %p2245_p11, %p2242_p10 }
  0x52   :  { %2250 = shalt.err (!%p2247_p12)
}
  0x53   :  { %s2251_s22 = scalar_lea.vmem %s2661_s28, 32  ;;  %p2256_p0 = scmp.lt.s32.totalorder %s2661_s28, %s2661_s28 }
  0x54   :  { %p2252_p13 = scmp.ne.s32.totalorder %s2661_s28, %s2251_s22  ;;  %p2257_p1 = scmp.lt.s32.totalorder %s2251_s22, %s2251_s22 }
  0x56   :  { %p2258_p2 = por %p2257_p1, %p2256_p0 }
  0x58   :  { %p2259_p3 = pnand %p2258_p2, %p2252_p13 }
  0x5a   :  { %2262 = shalt.err (!%p2259_p3)
}
  0x5b   :  { %128 = dma.hbm_to_vmem [thread:$0]  %s3164_s9, 32, %s2661_s28, [#allocation15], %s2505_s26, %s2505_s26, %s2506_s3  }
  0x5c   :  { %s2507_s24 = smov [#allocation17]   ;;  %s2508_s2 = smov [#allocation20]  }
  0x5d   :  { %s150_s23 = sshll.u32 %s2507_s24, 4  ;;  %s174_s0 = sshll.u32 %s2508_s2, 4  ;;  %s151_s23 = int_to_ptr.vmem [resolvable:$true] %s150_s23  ;;  %s2698_s0 = int_to_ptr.vmem [resolvable:$true] %s174_s0 }
  0x5e   :  { %s2263_s4 = scalar_lea.hbm %s3168_s13, 32 }
  0x5f   :  { %p2264_p4 = scmp.ne.s32.totalorder %s3168_s13, %s2263_s4  ;;  %p2267_p5 = scmp.lt.u32.totalorder %s2263_s4, %s3168_s13 }
  0x61   :  { %p2269_p6 = pnand %p2267_p5, %p2264_p4 }
  0x63   :  { %2272 = shalt.err (!%p2269_p6)
}
  0x64   :  { %s2273_s9 = scalar_lea.vmem %s151_s23, 32  ;;  %p2278_p8 = scmp.lt.s32.totalorder %s151_s23, %s151_s23 }
  0x65   :  { %p2274_p7 = scmp.ne.s32.totalorder %s151_s23, %s2273_s9  ;;  %p2279_p9 = scmp.lt.s32.totalorder %s2273_s9, %s2273_s9 }
  0x67   :  { %p2280_p10 = por %p2279_p9, %p2278_p8 }
  0x69   :  { %p2281_p11 = pnand %p2280_p10, %p2274_p7 }
  0x6b   :  { %2284 = shalt.err (!%p2281_p11)
}
  0x6c   :  { %156 = dma.hbm_to_vmem [thread:$0]  %s3168_s13, 32, %s151_s23, [#allocation18], %s2505_s26, %s2505_s26, %s2506_s3  }
  0x6d   :  { %s2285_s2 = scalar_lea.hbm %s3170_s15, 32 }
  0x6e   :  { %p2286_p12 = scmp.ne.s32.totalorder %s3170_s15, %s2285_s2  ;;  %p2289_p13 = scmp.lt.u32.totalorder %s2285_s2, %s3170_s15 }
  0x70   :  { %p2291_p0 = pnand %p2289_p13, %p2286_p12 }
  0x72   :  { %2294 = shalt.err (!%p2291_p0)
}
  0x73   :  { %s2295_s30 = scalar_lea.vmem %s2698_s0, 32  ;;  %p2300_p2 = scmp.lt.s32.totalorder %s2698_s0, %s2698_s0 }
  0x74   :  { %p2296_p1 = scmp.ne.s32.totalorder %s2698_s0, %s2295_s30  ;;  %p2301_p3 = scmp.lt.s32.totalorder %s2295_s30, %s2295_s30 }
  0x76   :  { %p2302_p4 = por %p2301_p3, %p2300_p2 }
  0x78   :  { %p2303_p5 = pnand %p2302_p4, %p2296_p1 }
  0x7a   :  { %2306 = shalt.err (!%p2303_p5)
}
  0x7b   :  { %180 = dma.hbm_to_vmem [thread:$0]  %s3170_s15, 32, %s2698_s0, [#allocation21], %s2505_s26, %s2505_s26, %s2506_s3  }
  0x7c   :  { %s2509_s1 = smov [#allocation2]   ;;  %s2510_s9 = smov [#allocation7]  }
  0x7d   :  { %s38_s22 = sshll.u32 %s2509_s1, 4  ;;  %s63_s28 = sshll.u32 %s2510_s9, 4  ;;  %s39_s22 = int_to_ptr.vmem [resolvable:$true] %s38_s22  ;;  %s64_s28 = int_to_ptr.vmem [resolvable:$true] %s63_s28 }
  0x7e   :  { %s3190_s24 = sld [smem:[#allocation32_spill]] }
  0x84   :  { %s2307_s2 = scalar_lea.hbm %s3190_s24, 256 }
  0x85   :  { %p2308_p6 = scmp.ne.s32.totalorder %s3190_s24, %s2307_s2  ;;  %p2311_p7 = scmp.lt.u32.totalorder %s2307_s2, %s3190_s24 }
  0x87   :  { %p2313_p8 = pnand %p2311_p7, %p2308_p6 }
  0x89   :  { %2316 = shalt.err (!%p2313_p8)
}
  0x8a   :  { %s2317_s15 = scalar_lea.vmem %s39_s22, 256  ;;  %p2322_p10 = scmp.lt.s32.totalorder %s39_s22, %s39_s22 }
  0x8b   :  { %p2318_p9 = scmp.ne.s32.totalorder %s39_s22, %s2317_s15  ;;  %p2323_p11 = scmp.lt.s32.totalorder %s2317_s15, %s2317_s15 }
  0x8d   :  { %p2324_p12 = por %p2323_p11, %p2322_p10 }
  0x8f   :  { %p2325_p13 = pnand %p2324_p12, %p2318_p9 }
  0x91   :  { %2328 = shalt.err (!%p2325_p13)
}
  0x92   :  { %s3191_s0 = smov 8   ;;  %s3192_s30 = smov 128  }
  0x93   :  { %44 = dma.hbm_to_vmem [thread:$0]  %s3190_s24, 256, %s39_s22, [#allocation3], %s3192_s30, %s3192_s30, %s3191_s0  }
  0x94   :  { %s3193_s7 = sld [smem:[#allocation34_spill]] }
  0x9a   :  { %s2329_s25 = scalar_lea.hbm %s3193_s7, 16 }
  0x9b   :  { %p2330_p0 = scmp.ne.s32.totalorder %s3193_s7, %s2329_s25  ;;  %p2333_p1 = scmp.lt.u32.totalorder %s2329_s25, %s3193_s7 }
  0x9d   :  { %p2335_p2 = pnand %p2333_p1, %p2330_p0 }
  0x9f   :  { %2338 = shalt.err (!%p2335_p2)
}
  0xa0   :  { %s2339_s29 = scalar_lea.vmem %s64_s28, 16  ;;  %s2343_s15 = scalar_lea.vmem %s64_s28, 32 }
  0xa1   :  { %p2340_p3 = scmp.ne.s32.totalorder %s64_s28, %s2339_s29  ;;  %p2344_p4 = scmp.lt.s32.totalorder %s64_s28, %s64_s28 }
  0xa2   :  { %p2345_p5 = scmp.lt.s32.totalorder %s2343_s15, %s2339_s29 }
  0xa4   :  { %p2346_p6 = por %p2345_p5, %p2344_p4 }
  0xa6   :  { %p2347_p7 = pnand %p2346_p6, %p2340_p3 }
  0xa8   :  { %2350 = shalt.err (!%p2347_p7)
}
  0xa9   :  { %66 = dma.hbm_to_vmem [thread:$0]  %s3193_s7, 16, %s64_s28, [#allocation6]  }
  0xaa   :  { %s2511_s0 = smov [#allocation10]   ;;  %s2512_s13 = smov [#allocation13]  }
  0xab   :  { %s84_s30 = sshll.u32 %s2511_s0, 4  ;;  %s110_s23 = sshll.u32 %s2512_s13, 4  ;;  %s85_s30 = int_to_ptr.vmem [resolvable:$true] %s84_s30  ;;  %s2762_s23 = int_to_ptr.vmem [resolvable:$true] %s110_s23 }
  0xac   :  { %s2351_s25 = scalar_lea.hbm %s3160_s5, 32 }
  0xad   :  { %p2352_p8 = scmp.ne.s32.totalorder %s3160_s5, %s2351_s25  ;;  %p2355_p9 = scmp.lt.u32.totalorder %s2351_s25, %s3160_s5 }
  0xaf   :  { %p2357_p10 = pnand %p2355_p9, %p2352_p8 }
  0xb1   :  { %2360 = shalt.err (!%p2357_p10)
}
  0xb2   :  { %s2361_s28 = scalar_lea.vmem %s85_s30, 32  ;;  %p2366_p12 = scmp.lt.s32.totalorder %s85_s30, %s85_s30 }
  0xb3   :  { %p2362_p11 = scmp.ne.s32.totalorder %s85_s30, %s2361_s28  ;;  %p2367_p13 = scmp.lt.s32.totalorder %s2361_s28, %s2361_s28 }
  0xb5   :  { %p2368_p0 = por %p2367_p13, %p2366_p12 }
  0xb7   :  { %p2369_p1 = pnand %p2368_p0, %p2362_p11 }
  0xb9   :  { %2372 = shalt.err (!%p2369_p1)
}
  0xba   :  { %90 = dma.hbm_to_vmem [thread:$0]  %s3160_s5, 32, %s85_s30, [#allocation9], %s2505_s26, %s2505_s26, %s2506_s3  }
  0xbb   :  { %s2373_s24 = scalar_lea.hbm %s3163_s8, 32 }
  0xbc   :  { %p2374_p2 = scmp.ne.s32.totalorder %s3163_s8, %s2373_s24  ;;  %p2377_p3 = scmp.lt.u32.totalorder %s2373_s24, %s3163_s8 }
  0xbe   :  { %p2379_p4 = pnand %p2377_p3, %p2374_p2 }
  0xc0   :  { %2382 = shalt.err (!%p2379_p4)
}
  0xc1   :  { %s2383_s25 = scalar_lea.vmem %s2762_s23, 32  ;;  %p2388_p6 = scmp.lt.s32.totalorder %s2762_s23, %s2762_s23 }
  0xc2   :  { %p2384_p5 = scmp.ne.s32.totalorder %s2762_s23, %s2383_s25  ;;  %p2389_p7 = scmp.lt.s32.totalorder %s2383_s25, %s2383_s25 }
  0xc4   :  { %p2390_p8 = por %p2389_p7, %p2388_p6 }
  0xc6   :  { %p2391_p9 = pnand %p2390_p8, %p2384_p5 }
  0xc8   :  { %2394 = shalt.err (!%p2391_p9)
}
  0xc9   :  { %116 = dma.hbm_to_vmem [thread:$0]  %s3163_s8, 32, %s2762_s23, [#allocation12], %s2505_s26, %s2505_s26, %s2506_s3  }
  0xca   :  { %s2513_s2 = smov [#allocation16]   ;;  %s2514_s27 = smov [#allocation19]  }
  0xcb   :  { %s136_s21 = sshll.u32 %s2513_s2, 4  ;;  %s162_s4 = sshll.u32 %s2514_s27, 4  ;;  %s137_s21 = int_to_ptr.vmem [resolvable:$true] %s136_s21  ;;  %s2799_s4 = int_to_ptr.vmem [resolvable:$true] %s162_s4 }
  0xcc   :  { %s2395_s29 = scalar_lea.hbm %s3166_s11, 32 }
  0xcd   :  { %p2396_p10 = scmp.ne.s32.totalorder %s3166_s11, %s2395_s29  ;;  %p2399_p11 = scmp.lt.u32.totalorder %s2395_s29, %s3166_s11 }
  0xcf   :  { %p2401_p12 = pnand %p2399_p11, %p2396_p10 }
  0xd1   :  { %2404 = shalt.err (!%p2401_p12)
}
  0xd2   :  { %s2405_s8 = scalar_lea.vmem %s137_s21, 32  ;;  %p2410_p0 = scmp.lt.s32.totalorder %s137_s21, %s137_s21 }
  0xd3   :  { %p2406_p13 = scmp.ne.s32.totalorder %s137_s21, %s2405_s8  ;;  %p2411_p1 = scmp.lt.s32.totalorder %s2405_s8, %s2405_s8 }
  0xd5   :  { %p2412_p2 = por %p2411_p1, %p2410_p0 }
  0xd7   :  { %p2413_p3 = pnand %p2412_p2, %p2406_p13 }
  0xd9   :  { %2416 = shalt.err (!%p2413_p3)
}
  0xda   :  { %142 = dma.hbm_to_vmem [thread:$0]  %s3166_s11, 32, %s137_s21, [#allocation15], %s2505_s26, %s2505_s26, %s2506_s3  }
  0xdb   :  { %s2417_s25 = scalar_lea.hbm %s3169_s14, 32 }
  0xdc   :  { %p2418_p4 = scmp.ne.s32.totalorder %s3169_s14, %s2417_s25  ;;  %p2421_p5 = scmp.lt.u32.totalorder %s2417_s25, %s3169_s14 }
  0xde   :  { %p2423_p6 = pnand %p2421_p5, %p2418_p4 }
  0xe0   :  { %2426 = shalt.err (!%p2423_p6)
}
  0xe1   :  { %s2427_s28 = scalar_lea.vmem %s2799_s4, 32  ;;  %p2432_p8 = scmp.lt.s32.totalorder %s2799_s4, %s2799_s4 }
  0xe2   :  { %p2428_p7 = scmp.ne.s32.totalorder %s2799_s4, %s2427_s28  ;;  %p2433_p9 = scmp.lt.s32.totalorder %s2427_s28, %s2427_s28 }
  0xe4   :  { %p2434_p10 = por %p2433_p9, %p2432_p8 }
  0xe6   :  { %p2435_p11 = pnand %p2434_p10, %p2428_p7 }
  0xe8   :  { %2438 = shalt.err (!%p2435_p11)
}
  0xe9   :  { %168 = dma.hbm_to_vmem [thread:$0]  %s3169_s14, 32, %s2799_s4, [#allocation18], %s2505_s26, %s2505_s26, %s2506_s3  }
  0xea   :  { %s2515_s7 = smov [#allocation22]   ;;  %s2439_s24 = scalar_lea.hbm %s3172_s17, 16 }
  0xeb   :  { %s189_s29 = sshll.u32 %s2515_s7, 4  ;;  %p2440_p12 = scmp.ne.s32.totalorder %s3172_s17, %s2439_s24  ;;  %s190_s29 = int_to_ptr.vmem [resolvable:$true] %s189_s29 }
  0xec   :  { %p2443_p13 = scmp.lt.u32.totalorder %s2439_s24, %s3172_s17 }
  0xee   :  { %p2445_p0 = pnand %p2443_p13, %p2440_p12 }
  0xf0   :  { %2448 = shalt.err (!%p2445_p0)
}
  0xf1   :  { %s2449_s1 = scalar_lea.vmem %s190_s29, 16  ;;  %s2453_s14 = scalar_lea.vmem %s190_s29, 32 }
  0xf2   :  { %p2450_p1 = scmp.ne.s32.totalorder %s190_s29, %s2449_s1  ;;  %p2454_p2 = scmp.lt.s32.totalorder %s190_s29, %s190_s29 }
  0xf3   :  { %p2455_p3 = scmp.lt.s32.totalorder %s2453_s14, %s2449_s1 }
  0xf5   :  { %p2456_p4 = por %p2455_p3, %p2454_p2 }
  0xf7   :  { %p2457_p5 = pnand %p2456_p4, %p2450_p1 }
  0xf9   :  { %2460 = shalt.err (!%p2457_p5)
}
  0xfa   :  { %192 = dma.hbm_to_vmem [thread:$0]  %s3172_s17, 16, %s190_s29, [#allocation21]  }
  0xfb   :  { %2483 = dma.done.wait [#allocation3], 256  }
  0xfc   :  { %2484 = vsyncadd [#allocation3], 4294967040 }
  0xfd   :  { %2485 = dma.done.wait [#allocation6], 272  }
  0xfe   :  { %2486 = vsyncadd [#allocation6], 4294967024 }
  0xff   :  { %2487 = dma.done.wait [#allocation9], 48  }
 0x100   :  { %2488 = vsyncadd [#allocation9], 4294967248 }
 0x101   :  { %2489 = dma.done.wait [#allocation12], 64  }
 0x102   :  { %2490 = vsyncadd [#allocation12], 4294967232 }
 0x103   :  { %2491 = dma.done.wait [#allocation15], 64  }
 0x104   :  { %2492 = vsyncadd [#allocation15], 4294967232 }
 0x105   :  { %2493 = dma.done.wait [#allocation18], 64  }
 0x106   :  { %2494 = vsyncadd [#allocation18], 4294967232 }
 0x107   :  { %2495 = dma.done.wait [#allocation21], 48  }
 0x108   :  { %2496 = vsyncadd [#allocation21], 4294967248  ;;  %vm253_vm0 = vcmask 261120   ;;  %v249_v0 = vld [vmem:[#allocation2] sm:$0xff]  ;;  %v250_v1 = vld [vmem:[#allocation2 + $0x8] sm:$0xff]  ;;  %s3194_s9 = sld [smem:[#allocation36_spill]]  ;;  %v237_v34 = vlaneseq }
 0x109   :  { %v254_v2 = vsel %vm253_vm0, %v249_v0, 0.0  ;;  %v257_v3 = vsel %vm253_vm0, %v250_v1, 0.0  ;;  %v2516_v15 = vmov 0.0   ;;  %vm2517_vm1 = vmmov 0   ;;  %v1791_v25 = vld [vmem:[#allocation7] ss:$0 sm:$0xff] }
 0x10a   :  { %255 = vadd.xlane.f32.xlu0 %v254_v2  ;;  %1923 = vmatprep.subr.bf16.mxu0 %v2516_v15  ;;  %v1792_v29 = vld [vmem:[#allocation8] ss:$0 sm:$0xff]  ;;  %v1793_v35 = vld [vmem:[#allocation10] ss:$0 sm:$0xff]  ;;  %v238_v42 = vand.u32 127, %v237_v34  ;;  %s2518_s30 = smov 96  }
 0x10b   :  { %1931 = vmatprep.subr.bf16.mxu1 %v2516_v15  ;;  %1927 = vmatprep.mubr.msk.bf16.mxu0 %vm2517_vm1, %v2516_v15  ;;  %s2519_s2 = smov 64   ;;  %v2907_v56 = vld [vmem:[#allocation5] sm:$0xff]  ;;  %vm423_vm6 = vcmask 130048   ;;  %v2909_v62 = vld [vmem:[#allocation5 + $0x8] sm:$0xff]  ;;  %vm871_vm7 = vcmask 523264   ;;  %vm1632_vm8 = vcmask 1040384  }
 0x10c   :  { %1933 = vmatprep.mubr.msk.bf16.mxu1 %vm2517_vm1, %v2516_v15  ;;  %vm240_vm2 = vcmp.lt.s32.totalorder %v238_v42, 16  ;;  %vm243_vm3 = vcmp.ge.s32.totalorder %v238_v42, 16  ;;  %vm244_vm4 = vcmp.lt.s32.totalorder %v238_v42, 32  ;;  %s2520_s4 = smov [#allocation23]  }
 0x10d   :  { %v2883_v44 = vsel %vm240_vm2, 1.0, %v2516_v15  ;;  %vm245_vm5 = vmand %vm243_vm3, %vm244_vm4  ;;  %s1776_s25 = sshll.u32 %s2520_s4, 4  ;;  %s1777_s25 = int_to_ptr.vmem [resolvable:$true] %s1776_s25 }
 0x10e   :  { %258 = vadd.xlane.f32.xlu0 %v257_v3  ;;  %v2089_v14 = vld [vmem:[%s3194_s9] sm:$0xff]   ;;  %v2090_v16 = vld [vmem:[%s3194_s9 + $0x8] sm:$0xff]   ;;  %v2889_v47 = vsel %vm245_vm5, 1.0, %v2516_v15  ;;  %p2466_p7 = scmp.lt.s32.totalorder %s1777_s25, %s1777_s25 }
 0x10f   :  { %1924 = vmatpush3.bf16.msra.mxu0 %v2089_v14 }
 0x110   :  { %1925 = vmatprep.subr.bf16.mxu0 %v2516_v15 }
 0x113   :  { %1926 = vmatpush3.bf16.msra.mxu0 %v2090_v16 }
 0x114   :  { %1937 = vmatprep.subr.bf16.mxu0 %v2516_v15 }
 0x197   :  { %v256_v4 = vpop.xlane.xlu0 %255 }
 0x198   :  { %v261_v5 = vmul.f32 0.03125, %v256_v4 }
 0x19a   :  { %v263_v6 = vsub.f32 %v249_v0, %v261_v5 }
 0x19b   :  { %v259_v7 = vpop.xlane.xlu0 %258 }
 0x19c   :  { %v262_v8 = vmul.f32 0.03125, %v259_v7  ;;  %v265_v9 = vmul.f32 %v263_v6, %v263_v6 }
 0x19e   :  { %v264_v10 = vsub.f32 %v250_v1, %v262_v8  ;;  %v267_v11 = vsel %vm253_vm0, %v265_v9, 0.0 }
 0x19f   :  { %268 = vadd.xlane.f32.xlu1 %v267_v11 }
 0x1a0   :  { %v266_v12 = vmul.f32 %v264_v10, %v264_v10 }
 0x1a2   :  { %v270_v13 = vsel %vm253_vm0, %v266_v12, 0.0 }
 0x1a3   :  { %271 = vadd.xlane.f32.xlu1 %v270_v13 }
 0x22c   :  { %v269_v17 = vpop.xlane.xlu1 %268 }
 0x22d   :  { %v273_v18 = vmul.f32 0.03125, %v269_v17 }
 0x22f   :  { %v275_v19 = vadd.f32 1e-12, %v273_v18 }
 0x230   :  { %v272_v20 = vpop.xlane.xlu1 %271 }
 0x231   :  { %2113 = vrsqrt.f32 %v275_v19  ;;  %v274_v21 = vmul.f32 0.03125, %v272_v20 }
 0x233   :  { %v276_v22 = vadd.f32 1e-12, %v274_v21 }
 0x235   :  { %2115 = vrsqrt.f32 %v276_v22 }
 0x23b   :  { %v2114_v23 = vpop.eup %2113 }
 0x23c   :  { %v279_v24 = vmul.f32 %v2114_v23, %v263_v6 }
 0x23e   :  { %v287_v28 = vmul.f32 %v1791_v25, %v279_v24 }
 0x23f   :  { %v2116_v26 = vpop.eup %2115 }
 0x240   :  { %v280_v27 = vmul.f32 %v2116_v26, %v264_v10  ;;  %v2866_v31 = vadd.f32 %v1792_v29, %v287_v28 }
 0x242   :  { %v288_v30 = vmul.f32 %v1791_v25, %v280_v27 }
 0x244   :  { %v2868_v32 = vadd.f32 %v1792_v29, %v288_v30 }
 0x246   :  { %v297_v33 = vpack.c.bf16 %v2868_v32, %v2866_v31 }
 0x248   :  { %1928 = vmatmul.mubr.msk.bf16.vlgmr.msra.gmra.mrb[0].mxu0 %vm253_vm0, %v297_v33 }
 0x249   :  { %1939 = vmatprep.mubr.msk.bf16.mxu0 %vm2517_vm1, %v2516_v15 }
 0x31b   :  { %v358_v36 = vpop.f32.mrb[0].mxu0 }
 0x31c   :  { %v1929_v37 = vpop.f32.mrb[1].mxu0  ;;  %v2875_v39 = vadd.f32 %v1793_v35, %v358_v36 }
 0x31d   :  { %v361_v38 = vpop.f32.mrb[2].mxu0 }
 0x31e   :  { %v2877_v40 = vadd.f32 %v1793_v35, %v361_v38  ;;  %v1930_v41 = vpop.f32.mrb[3].mxu0  ;;  %v366_v50 = vmul.f32 %v2875_v39, %v2883_v44  ;;  %v454_v51 = vmul.f32 %v2875_v39, %v2889_v47 }
 0x320   :  { %v365_v43 = vpack.c.bf16 %v2877_v40, %v2875_v39  ;;  %v367_v48 = vmul.f32 %v2877_v40, %v2883_v44  ;;  %v455_v49 = vmul.f32 %v2877_v40, %v2889_v47 }
 0x322   :  { %370 = vrot.lane.b32.xlu0 %v365_v43, %s2518_s30  ;;  %v368_v52 = vpack.c.bf16 %v367_v48, %v366_v50  ;;  %v456_v53 = vpack.c.bf16 %v455_v49, %v454_v51 }
 0x326   :  { %447 = vrot.lane.b32.xlu0 %v2883_v44, %s2519_s2 }
 0x394   :  { %v371_v45 = vpop.permute.xlu0 %370 }
 0x395   :  { %v376_v46 = vsel %vm253_vm0, %v371_v45, 0 }
 0x396   :  { %1932 = vmatpush3.bf16.xpose.msra.mxu1 %v376_v46  ;;  %1938 = vmatpush3.bf16.xpose.msra.mxu0 %v376_v46  ;;  %v2091_v46 = vld [vmem:[%s3161_s6] sm:$0xff]  }
 0x397   :  { %1943 = vmatprep.subr.bf16.mxu1 %v2516_v15  ;;  %1955 = vmatprep.subr.bf16.mxu0 %v2516_v15 }
 0x398   :  { %v2925_v35 = vpop.permute.xlu0 %447 }
 0x399   :  { %v450_v36 = vmul.f32 %v2925_v35, %v2875_v39  ;;  %v451_v37 = vmul.f32 %v2925_v35, %v2877_v40 }
 0x39b   :  { %v452_v38 = vpack.c.bf16 %v451_v37, %v450_v36 }
 0x39d   :  { %1934 = vmatmul.mubr.msk.bf16.vlgmr.msra.gmra.mrb[0].mxu1 %vm253_vm0, %v368_v52  ;;  %1940 = vmatmul.mubr.msk.bf16.vlgmr.msra.gmra.mrb[4].mxu0 %vm253_vm0, %v456_v53 }
 0x39e   :  { %1945 = vmatprep.mubr.msk.bf16.mxu1 %vm2517_vm1, %v2516_v15  ;;  %1959 = vmatprep.mubr.msk.bf16.mxu0 %vm2517_vm1, %v2516_v15 }
 0x39f   :  { %1956 = vmatpush3.bf16.msra.mxu0 %v2091_v46 }
 0x3a0   :  { %1957 = vmatprep.subr.bf16.mxu0 %v2516_v15 }
 0x470   :  { %v412_v54 = vpop.f32.mrb[0].mxu1  ;;  %v494_v55 = vpop.f32.mrb[4].mxu0 }
 0x471   :  { %v501_v57 = vmul.f32 0.25, %v494_v55  ;;  %v1935_v58 = vpop.f32.mrb[1].mxu1  ;;  %v1941_v59 = vpop.f32.mrb[5].mxu0  ;;  %v419_v3 = vmul.f32 0.25, %v412_v54 }
 0x472   :  { %v415_v60 = vpop.f32.mrb[2].mxu1  ;;  %v497_v61 = vpop.f32.mrb[6].mxu0 }
 0x473   :  { %v502_v63 = vmul.f32 0.25, %v497_v61  ;;  %v1936_v0 = vpop.f32.mrb[3].mxu1  ;;  %v1942_v1 = vpop.f32.mrb[7].mxu0  ;;  %v503_v2 = vadd.f32 %v501_v57, %v2907_v56  ;;  %v420_v6 = vmul.f32 0.25, %v415_v60  ;;  %v421_v8 = vadd.f32 %v419_v3, %v2907_v56 }
 0x474   :  { %v2092_v0 = vld [vmem:[%s3161_s6 + $0x8] sm:$0xff]  }
 0x475   :  { %v505_v4 = vsel %vm423_vm6, %v503_v2, -inf  ;;  %v504_v5 = vadd.f32 %v502_v63, %v2909_v62  ;;  %v424_v9 = vsel %vm423_vm6, %v421_v8, -inf  ;;  %v422_v10 = vadd.f32 %v420_v6, %v2909_v62  ;;  %1958 = vmatpush3.bf16.msra.mxu0 %v2092_v0  ;;  %v1801_v6 = vld [vmem:[#allocation11] ss:$0 sm:$0xff] }
 0x476   :  { %506 = vmax.xlane.f32.xlu1 %v505_v4  ;;  %1963 = vmatprep.subr.bf16.mxu0 %v2516_v15 }
 0x477   :  { %v508_v7 = vsel %vm423_vm6, %v504_v5, -inf  ;;  %v427_v11 = vsel %vm423_vm6, %v422_v10, -inf }
 0x47a   :  { %509 = vmax.xlane.f32.xlu1 %v508_v7 }
 0x47e   :  { %425 = vmax.xlane.f32.xlu1 %v424_v9 }
 0x482   :  { %428 = vmax.xlane.f32.xlu1 %v427_v11 }
 0x493   :  { %528 = vrot.lane.b32.xlu1 %v2889_v47, %s2519_s2 }
 0x503   :  { %v507_v12 = vpop.xlane.xlu1 %506 }
 0x504   :  { %v511_v13 = vsub.f32 %v503_v2, %v507_v12 }
 0x506   :  { %v513_v14 = vmul.f32 1.442695, %v511_v13 }
 0x507   :  { %v510_v16 = vpop.xlane.xlu1 %509 }
 0x508   :  { %2117 = vpow2.f32 %v513_v14  ;;  %v512_v17 = vsub.f32 %v504_v5, %v510_v16 }
 0x50a   :  { %v515_v18 = vmul.f32 1.442695, %v512_v17 }
 0x50b   :  { %v426_v19 = vpop.xlane.xlu1 %425 }
 0x50c   :  { %2119 = vpow2.f32 %v515_v18  ;;  %v430_v20 = vsub.f32 %v421_v8, %v426_v19 }
 0x50e   :  { %v432_v21 = vmul.f32 1.442695, %v430_v20 }
 0x50f   :  { %v429_v22 = vpop.xlane.xlu1 %428 }
 0x510   :  { %2121 = vpow2.f32 %v432_v21  ;;  %v431_v23 = vsub.f32 %v422_v10, %v429_v22 }
 0x512   :  { %v2118_v24 = vpop.eup %2117  ;;  %v434_v25 = vmul.f32 1.442695, %v431_v23 }
 0x513   :  { %v517_v26 = vsel %vm423_vm6, %v2118_v24, 0.0  ;;  %v2932_v41 = vpop.permute.xlu1 %528 }
 0x514   :  { %2123 = vpow2.f32 %v434_v25  ;;  %518 = vadd.xlane.f32.xlu0 %v517_v26  ;;  %v531_v42 = vmul.f32 %v2932_v41, %v2875_v39  ;;  %v532_v43 = vmul.f32 %v2932_v41, %v2877_v40 }
 0x516   :  { %v2120_v27 = vpop.eup %2119  ;;  %v533_v45 = vpack.c.bf16 %v532_v43, %v531_v42  ;;  %v1805_v42 = vld [vmem:[#allocation13] ss:$0 sm:$0xff] }
 0x517   :  { %v520_v28 = vsel %vm423_vm6, %v2120_v27, 0.0 }
 0x518   :  { %521 = vadd.xlane.f32.xlu1 %v520_v28 }
 0x51a   :  { %v2122_v29 = vpop.eup %2121 }
 0x51b   :  { %v436_v30 = vsel %vm423_vm6, %v2122_v29, 0.0 }
 0x51c   :  { %437 = vadd.xlane.f32.xlu0 %v436_v30 }
 0x51e   :  { %v2124_v33 = vpop.eup %2123 }
 0x51f   :  { %v439_v34 = vsel %vm423_vm6, %v2124_v33, 0.0 }
 0x520   :  { %440 = vadd.xlane.f32.xlu0 %v439_v34 }
 0x529   :  { %584 = vrot.lane.b32.xlu1 %v452_v38, %s2519_s2 }
 0x536   :  { %536 = vrot.lane.b32.xlu0 %v533_v45, %s2519_s2 }
 0x5a1   :  { %v519_v48 = vpop.xlane.xlu0 %518 }
 0x5a2   :  { %2125 = vrcp.f32 %v519_v48  ;;  %v1806_v48 = vld [vmem:[#allocation14] ss:$0 sm:$0xff] }
 0x5a5   :  { %v522_v49 = vpop.xlane.xlu1 %521 }
 0x5a6   :  { %2127 = vrcp.f32 %v522_v49 }
 0x5a9   :  { %v438_v50 = vpop.xlane.xlu0 %437  ;;  %v585_v57 = vpop.permute.xlu1 %584 }
 0x5ac   :  { %v2126_v39 = vpop.eup %2125 }
 0x5ad   :  { %v441_v51 = vpop.xlane.xlu0 %440  ;;  %v525_v40 = vmul.f32 %v2126_v39, %v2118_v24 }
 0x5ae   :  { %2129 = vrcp.f32 %v441_v51 }
 0x5af   :  { %2131 = vrcp.f32 %v438_v50 }
 0x5b0   :  { %v2128_v52 = vpop.eup %2127 }
 0x5b1   :  { %v526_v53 = vmul.f32 %v2128_v52, %v2120_v27  ;;  %v537_v54 = vpop.permute.xlu0 %536  ;;  %v2094_v27 = vld [vmem:[%s3165_s10 + $0x8] sm:$0xff]   ;;  %v2095_v52 = vld [vmem:[%s3167_s12] sm:$0xff]  }
 0x5b2   :  { %1944 = vmatpush3.bf16.msra.mxu1 %v537_v54  ;;  %v2098_v54 = vld [vmem:[%s3167_s12 + $0x18] sm:$0xff]  }
 0x5b3   :  { %v534_v55 = vpack.c.bf16 %v526_v53, %v525_v40  ;;  %1949 = vmatprep.subr.bf16.mxu1 %v2516_v15  ;;  %v2096_v40 = vld [vmem:[%s3167_s12 + $0x8] sm:$0xff]   ;;  %v2097_v53 = vld [vmem:[%s3167_s12 + $0x10] sm:$0xff]  }
 0x5b5   :  { %1946 = vmatmul.mubr.msk.bf16.vlgmr.msra.gmra.mrb[4].mxu1 %vm423_vm6, %v534_v55  ;;  %v1807_v55 = vld [vmem:[#allocation16] ss:$0 sm:$0xff] }
 0x5b6   :  { %1950 = vmatpush3.bf16.msra.mxu1 %v585_v57  ;;  %1951 = vmatprep.mubr.msk.bf16.mxu1 %vm2517_vm1, %v2516_v15 }
 0x5b7   :  { %1971 = vmatprep.subr.bf16.mxu1 %v2516_v15 }
 0x5b8   :  { %v2130_v58 = vpop.eup %2129 }
 0x5b9   :  { %v2132_v59 = vpop.eup %2131  ;;  %v445_v60 = vmul.f32 %v2130_v58, %v2124_v33 }
 0x5ba   :  { %v444_v61 = vmul.f32 %v2132_v59, %v2122_v29 }
 0x5bc   :  { %v453_v63 = vpack.c.bf16 %v445_v60, %v444_v61 }
 0x5c1   :  { %1952 = vmatmul.mubr.msk.bf16.vlgmr.msra.gmra.mrb[4].mxu1 %vm423_vm6, %v453_v63 }
 0x5c2   :  { %1979 = vmatprep.mubr.msk.bf16.mxu1 %vm2517_vm1, %v2516_v15  ;;  %1972 = vmatpush3.bf16.msra.mxu1 %v2095_v52 }
 0x5c3   :  { %1973 = vmatprep.subr.bf16.mxu1 %v2516_v15 }
 0x5c6   :  { %1974 = vmatpush3.bf16.msra.mxu1 %v2096_v40 }
 0x5c7   :  { %1975 = vmatprep.subr.bf16.mxu1 %v2516_v15 }
 0x5ca   :  { %1976 = vmatpush3.bf16.msra.mxu1 %v2097_v53 }
 0x5cb   :  { %1977 = vmatprep.subr.bf16.mxu1 %v2516_v15 }
 0x5ce   :  { %1978 = vmatpush3.bf16.msra.mxu1 %v2098_v54  ;;  %v1817_v54 = vld [vmem:[#allocation19] ss:$0 sm:$0xff] }
 0x5cf   :  { %1997 = vmatprep.subr.bf16.mxu1 %v2516_v15 }
 0x694   :  { %v624_v1 = vpop.f32.mrb[4].mxu1 }
 0x695   :  { %v1953_v2 = vpop.f32.mrb[5].mxu1 }
 0x696   :  { %v627_v3 = vpop.f32.mrb[6].mxu1 }
 0x697   :  { %v631_v4 = vpack.c.bf16 %v627_v3, %v624_v1  ;;  %v1954_v5 = vpop.f32.mrb[7].mxu1 }
 0x699   :  { %1960 = vmatmul.mubr.msk.bf16.vlgmr.msra.gmra.mrb[8].mxu0 %vm253_vm0, %v631_v4 }
 0x69a   :  { %1967 = vmatprep.mubr.msk.bf16.mxu0 %vm2517_vm1, %v2516_v15 }
 0x76c   :  { %v692_v7 = vpop.f32.mrb[8].mxu0 }
 0x76d   :  { %v693_v8 = vadd.f32 %v1801_v6, %v692_v7  ;;  %v1961_v9 = vpop.f32.mrb[9].mxu0 }
 0x76e   :  { %v695_v10 = vpop.f32.mrb[10].mxu0 }
 0x76f   :  { %v696_v11 = vadd.f32 %v1801_v6, %v695_v10  ;;  %v1962_v12 = vpop.f32.mrb[11].mxu0  ;;  %v699_v13 = vadd.f32 %v693_v8, %v2866_v31 }
 0x771   :  { %v703_v14 = vsel %vm253_vm0, %v699_v13, 0.0  ;;  %v700_v16 = vadd.f32 %v696_v11, %v2868_v32  ;;  %v2093_v32 = vld [vmem:[%s3165_s10] sm:$0xff]  }
 0x772   :  { %704 = vadd.xlane.f32.xlu1 %v703_v14  ;;  %1964 = vmatpush3.bf16.msra.mxu0 %v2093_v32 }
 0x773   :  { %v706_v17 = vsel %vm253_vm0, %v700_v16, 0.0  ;;  %1965 = vmatprep.subr.bf16.mxu0 %v2516_v15 }
 0x774   :  { %707 = vadd.xlane.f32.xlu0 %v706_v17 }
 0x776   :  { %1966 = vmatpush3.bf16.msra.mxu0 %v2094_v27 }
 0x777   :  { %1983 = vmatprep.subr.bf16.mxu0 %v2516_v15 }
 0x7ff   :  { %v705_v18 = vpop.xlane.xlu1 %704 }
 0x800   :  { %v709_v19 = vmul.f32 0.03125, %v705_v18 }
 0x801   :  { %v708_v20 = vpop.xlane.xlu0 %707 }
 0x802   :  { %v711_v21 = vsub.f32 %v699_v13, %v709_v19  ;;  %v710_v22 = vmul.f32 0.03125, %v708_v20  ;;  %v1811_v20 = vld [vmem:[#allocation17] ss:$0 sm:$0xff] }
 0x804   :  { %v712_v23 = vsub.f32 %v700_v16, %v710_v22  ;;  %v713_v24 = vmul.f32 %v711_v21, %v711_v21 }
 0x806   :  { %v715_v25 = vsel %vm253_vm0, %v713_v24, 0.0  ;;  %v714_v26 = vmul.f32 %v712_v23, %v712_v23 }
 0x807   :  { %716 = vadd.xlane.f32.xlu0 %v715_v25 }
 0x808   :  { %v718_v31 = vsel %vm253_vm0, %v714_v26, 0.0 }
 0x80b   :  { %719 = vadd.xlane.f32.xlu0 %v718_v31 }
 0x894   :  { %v717_v28 = vpop.xlane.xlu0 %716 }
 0x895   :  { %v721_v29 = vmul.f32 0.03125, %v717_v28 }
 0x897   :  { %v723_v30 = vadd.f32 1e-12, %v721_v29 }
 0x898   :  { %v720_v33 = vpop.xlane.xlu0 %719 }
 0x899   :  { %2133 = vrsqrt.f32 %v723_v30  ;;  %v722_v34 = vmul.f32 0.03125, %v720_v33 }
 0x89b   :  { %v724_v36 = vadd.f32 1e-12, %v722_v34 }
 0x89d   :  { %2135 = vrsqrt.f32 %v724_v36 }
 0x8a3   :  { %v2134_v37 = vpop.eup %2133 }
 0x8a4   :  { %v727_v38 = vmul.f32 %v2134_v37, %v711_v21 }
 0x8a6   :  { %v735_v45 = vmul.f32 %v1805_v42, %v727_v38 }
 0x8a7   :  { %v2136_v43 = vpop.eup %2135 }
 0x8a8   :  { %v728_v46 = vmul.f32 %v2136_v43, %v712_v23  ;;  %v743_v50 = vadd.f32 %v1806_v48, %v735_v45 }
 0x8aa   :  { %v736_v49 = vmul.f32 %v1805_v42, %v728_v46  ;;  %v2099_v46 = vld [vmem:[%s3194_s9 + $0x10] sm:$0xff]  }
 0x8ac   :  { %v744_v51 = vadd.f32 %v1806_v48, %v736_v49  ;;  %v2100_v48 = vld [vmem:[%s3194_s9 + $0x18] sm:$0xff]  }
 0x8ae   :  { %v745_v39 = vpack.c.bf16 %v744_v51, %v743_v50 }
 0x8b0   :  { %1968 = vmatmul.mubr.msk.bf16.vlgmr.msra.gmra.mrb[12].mxu0 %vm253_vm0, %v745_v39 }
 0x8b1   :  { %1987 = vmatprep.mubr.msk.bf16.mxu0 %vm2517_vm1, %v2516_v15  ;;  %1984 = vmatpush3.bf16.msra.mxu0 %v2099_v46 }
 0x8b2   :  { %1985 = vmatprep.subr.bf16.mxu0 %v2516_v15 }
 0x8b5   :  { %1986 = vmatpush3.bf16.msra.mxu0 %v2100_v48 }
 0x8b6   :  { %1991 = vmatprep.subr.bf16.mxu0 %v2516_v15 }
 0x983   :  { %v806_v57 = vpop.f32.mrb[12].mxu0 }
 0x984   :  { %v807_v58 = vadd.f32 %v1807_v55, %v806_v57  ;;  %v1969_v59 = vpop.f32.mrb[13].mxu0 }
 0x985   :  { %v809_v60 = vpop.f32.mrb[14].mxu0 }
 0x986   :  { %v815_v61 = vmul.f32 0.044715, %v807_v58  ;;  %v810_v63 = vadd.f32 %v1807_v55, %v809_v60  ;;  %v1970_v0 = vpop.f32.mrb[15].mxu0  ;;  %v813_v13 = vmul.f32 0.5, %v807_v58  ;;  %v1818_v60 = vld [vmem:[#allocation20] ss:$0 sm:$0xff] }
 0x988   :  { %v817_v1 = vmul.f32 %v815_v61, %v807_v58  ;;  %v816_v2 = vmul.f32 0.044715, %v810_v63  ;;  %v814_v14 = vmul.f32 0.5, %v810_v63 }
 0x98a   :  { %v819_v3 = vmul.f32 %v817_v1, %v807_v58  ;;  %v818_v4 = vmul.f32 %v816_v2, %v810_v63  ;;  %v1823_v2 = vld [vmem:[#allocation10 + $0x1] ss:$0 sm:$0xff] }
 0x98c   :  { %v821_v5 = vadd.f32 %v819_v3, %v807_v58  ;;  %v820_v6 = vmul.f32 %v818_v4, %v810_v63 }
 0x98e   :  { %v823_v7 = vmul.f32 0.7978846, %v821_v5  ;;  %v822_v8 = vadd.f32 %v820_v6, %v810_v63 }
 0x990   :  { %2137 = vtanh.f32 %v823_v7  ;;  %v824_v9 = vmul.f32 0.7978846, %v822_v8 }
 0x992   :  { %2139 = vtanh.f32 %v824_v9 }
 0x99a   :  { %v2138_v10 = vpop.eup %2137 }
 0x99b   :  { %v827_v11 = vadd.f32 1.0, %v2138_v10 }
 0x99c   :  { %v2140_v12 = vpop.eup %2139 }
 0x99d   :  { %v828_v16 = vadd.f32 1.0, %v2140_v12  ;;  %v829_v17 = vmul.f32 %v827_v11, %v813_v13 }
 0x99f   :  { %v830_v18 = vmul.f32 %v828_v16, %v814_v14 }
 0x9a1   :  { %v831_v19 = vpack.c.bf16 %v830_v18, %v829_v17 }
 0x9a3   :  { %1980 = vmatmul.mubr.msk.bf16.vlgmr.msra.gmra.mrb[8].mxu1 %vm871_vm7, %v831_v19 }
 0x9a4   :  { %1999 = vmatprep.mubr.msk.bf16.mxu1 %vm2517_vm1, %v2516_v15 }
 0xa76   :  { %v909_v21 = vpop.f32.mrb[8].mxu1 }
 0xa77   :  { %v910_v22 = vadd.f32 %v1811_v20, %v909_v21  ;;  %v1981_v23 = vpop.f32.mrb[9].mxu1 }
 0xa78   :  { %v912_v24 = vpop.f32.mrb[10].mxu1 }
 0xa79   :  { %v913_v25 = vadd.f32 %v1811_v20, %v912_v24  ;;  %v1982_v26 = vpop.f32.mrb[11].mxu1  ;;  %v916_v31 = vadd.f32 %v910_v22, %v743_v50 }
 0xa7b   :  { %v920_v32 = vsel %vm253_vm0, %v916_v31, 0.0  ;;  %v917_v27 = vadd.f32 %v913_v25, %v744_v51 }
 0xa7c   :  { %921 = vadd.xlane.f32.xlu1 %v920_v32 }
 0xa7d   :  { %v923_v28 = vsel %vm253_vm0, %v917_v27, 0.0 }
 0xa7e   :  { %924 = vadd.xlane.f32.xlu0 %v923_v28 }
 0xb09   :  { %v922_v29 = vpop.xlane.xlu1 %921 }
 0xb0a   :  { %v926_v30 = vmul.f32 0.03125, %v922_v29 }
 0xb0b   :  { %v925_v33 = vpop.xlane.xlu0 %924 }
 0xb0c   :  { %v928_v34 = vsub.f32 %v916_v31, %v926_v30  ;;  %v927_v36 = vmul.f32 0.03125, %v925_v33 }
 0xb0e   :  { %v929_v37 = vsub.f32 %v917_v27, %v927_v36  ;;  %v930_v38 = vmul.f32 %v928_v34, %v928_v34 }
 0xb10   :  { %v932_v42 = vsel %vm253_vm0, %v930_v38, 0.0  ;;  %v931_v43 = vmul.f32 %v929_v37, %v929_v37 }
 0xb11   :  { %933 = vadd.xlane.f32.xlu1 %v932_v42 }
 0xb12   :  { %v935_v45 = vsel %vm253_vm0, %v931_v43, 0.0 }
 0xb13   :  { %936 = vadd.xlane.f32.xlu0 %v935_v45 }
 0xb9e   :  { %v934_v49 = vpop.xlane.xlu1 %933 }
 0xb9f   :  { %v938_v50 = vmul.f32 0.03125, %v934_v49 }
 0xba0   :  { %v937_v51 = vpop.xlane.xlu0 %936 }
 0xba1   :  { %v940_v39 = vadd.f32 1e-12, %v938_v50  ;;  %v939_v52 = vmul.f32 0.03125, %v937_v51 }
 0xba3   :  { %2141 = vrsqrt.f32 %v940_v39  ;;  %v941_v40 = vadd.f32 1e-12, %v939_v52 }
 0xba5   :  { %2143 = vrsqrt.f32 %v941_v40 }
 0xbad   :  { %v2142_v53 = vpop.eup %2141 }
 0xbae   :  { %v944_v55 = vmul.f32 %v2142_v53, %v928_v34 }
 0xbaf   :  { %v2144_v57 = vpop.eup %2143 }
 0xbb0   :  { %v952_v58 = vmul.f32 %v1817_v54, %v944_v55  ;;  %v945_v59 = vmul.f32 %v2144_v57, %v929_v37 }
 0xbb2   :  { %v953_v61 = vmul.f32 %v1817_v54, %v945_v59  ;;  %v3006_v63 = vadd.f32 %v1818_v60, %v952_v58 }
 0xbb4   :  { %v3008_v0 = vadd.f32 %v1818_v60, %v953_v61 }
 0xbb6   :  { %v962_v1 = vpack.c.bf16 %v3008_v0, %v3006_v63 }
 0xbb8   :  { %1988 = vmatmul.mubr.msk.bf16.vlgmr.msra.gmra.mrb[16].mxu0 %vm253_vm0, %v962_v1 }
 0xbb9   :  { %1993 = vmatprep.mubr.msk.bf16.mxu0 %vm2517_vm1, %v2516_v15 }
 0xc8b   :  { %v1025_v3 = vpop.f32.mrb[16].mxu0 }
 0xc8c   :  { %v1026_v4 = vadd.f32 %v1823_v2, %v1025_v3  ;;  %v1989_v5 = vpop.f32.mrb[17].mxu0  ;;  %v2101_v3 = vld [vmem:[%s3161_s6 + $0x10] sm:$0xff]  }
 0xc8d   :  { %v1028_v6 = vpop.f32.mrb[18].mxu0 }
 0xc8e   :  { %v1029_v7 = vadd.f32 %v1823_v2, %v1028_v6  ;;  %v1990_v8 = vpop.f32.mrb[19].mxu0  ;;  %v1033_v9 = vmul.f32 %v1026_v4, %v2883_v44  ;;  %v1116_v10 = vmul.f32 %v1026_v4, %v2889_v47  ;;  %v3018_v11 = vmul.f32 %v1026_v4, %v2925_v35 }
 0xc8f   :  { %v3026_v17 = vmul.f32 %v1026_v4, %v2932_v41 }
 0xc90   :  { %v1034_v12 = vmul.f32 %v1029_v7, %v2883_v44  ;;  %v1117_v13 = vmul.f32 %v1029_v7, %v2889_v47  ;;  %v1032_v14 = vpack.c.bf16 %v1029_v7, %v1026_v4  ;;  %v3023_v16 = vmul.f32 %v1029_v7, %v2925_v35 }
 0xc91   :  { %v3029_v18 = vmul.f32 %v1029_v7, %v2932_v41 }
 0xc92   :  { %1037 = vrot.lane.b32.xlu1 %v1032_v14, %s2518_s30  ;;  %v1035_v19 = vpack.c.bf16 %v1034_v12, %v1033_v9  ;;  %v1118_v20 = vpack.c.bf16 %v1117_v13, %v1116_v10  ;;  %v1114_v21 = vpack.c.bf16 %v3023_v16, %v3018_v11 }
 0xc93   :  { %v1191_v44 = vpack.c.bf16 %v3029_v18, %v3026_v17 }
 0xd04   :  { %v1038_v47 = vpop.permute.xlu1 %1037 }
 0xd05   :  { %v1043_v35 = vsel %vm253_vm0, %v1038_v47, 0 }
 0xd06   :  { %1992 = vmatpush3.bf16.xpose.msra.mxu0 %v1043_v35  ;;  %1998 = vmatpush3.bf16.xpose.msra.mxu1 %v1043_v35 }
 0xd07   :  { %2003 = vmatprep.subr.bf16.mxu0 %v2516_v15  ;;  %2015 = vmatprep.subr.bf16.mxu1 %v2516_v15 }
 0xd0d   :  { %1994 = vmatmul.mubr.msk.bf16.vlgmr.msra.gmra.mrb[20].mxu0 %vm253_vm0, %v1035_v19  ;;  %2000 = vmatmul.mubr.msk.bf16.vlgmr.msra.gmra.mrb[12].mxu1 %vm253_vm0, %v1118_v20 }
 0xd0e   :  { %2005 = vmatprep.mubr.msk.bf16.mxu0 %vm2517_vm1, %v2516_v15  ;;  %2019 = vmatprep.mubr.msk.bf16.mxu1 %vm2517_vm1, %v2516_v15 }
 0xd0f   :  { %2016 = vmatpush3.bf16.msra.mxu1 %v2101_v3  ;;  %v2105_v3 = vld [vmem:[%s3167_s12 + $0x20] sm:$0xff]  }
 0xd10   :  { %2017 = vmatprep.subr.bf16.mxu1 %v2516_v15 }
 0xde0   :  { %v1079_v41 = vpop.f32.mrb[20].mxu0  ;;  %v1156_v22 = vpop.f32.mrb[12].mxu1 }
 0xde1   :  { %v1163_v23 = vmul.f32 0.25, %v1156_v22  ;;  %v1995_v24 = vpop.f32.mrb[21].mxu0  ;;  %v2001_v25 = vpop.f32.mrb[13].mxu1  ;;  %v1086_v30 = vmul.f32 0.25, %v1079_v41 }
 0xde2   :  { %v1082_v26 = vpop.f32.mrb[22].mxu0  ;;  %v1159_v31 = vpop.f32.mrb[14].mxu1 }
 0xde3   :  { %v1164_v32 = vmul.f32 0.25, %v1159_v31  ;;  %v1996_v27 = vpop.f32.mrb[23].mxu0  ;;  %v2002_v28 = vpop.f32.mrb[15].mxu1  ;;  %v1165_v29 = vadd.f32 %v1163_v23, %v2907_v56  ;;  %v1087_v36 = vmul.f32 0.25, %v1082_v26  ;;  %v1088_v38 = vadd.f32 %v1086_v30, %v2907_v56  ;;  %v1835_v23 = vld [vmem:[#allocation11 + $0x1] ss:$0 sm:$0xff] }
 0xde5   :  { %v1167_v33 = vsel %vm423_vm6, %v1165_v29, -inf  ;;  %v1166_v34 = vadd.f32 %v1164_v32, %v2909_v62  ;;  %v1090_v42 = vsel %vm423_vm6, %v1088_v38, -inf  ;;  %v1089_v43 = vadd.f32 %v1087_v36, %v2909_v62 }
 0xde6   :  { %1168 = vmax.xlane.f32.xlu0 %v1167_v33 }
 0xde7   :  { %v1170_v37 = vsel %vm423_vm6, %v1166_v34, -inf  ;;  %v1093_v45 = vsel %vm423_vm6, %v1089_v43, -inf }
 0xdea   :  { %1171 = vmax.xlane.f32.xlu0 %v1170_v37 }
 0xdee   :  { %1091 = vmax.xlane.f32.xlu0 %v1090_v42 }
 0xdf2   :  { %1094 = vmax.xlane.f32.xlu0 %v1093_v45 }
 0xe73   :  { %v1169_v46 = vpop.xlane.xlu0 %1168 }
 0xe74   :  { %v1173_v48 = vsub.f32 %v1165_v29, %v1169_v46 }
 0xe76   :  { %v1175_v49 = vmul.f32 1.442695, %v1173_v48 }
 0xe77   :  { %v1172_v50 = vpop.xlane.xlu0 %1171 }
 0xe78   :  { %2145 = vpow2.f32 %v1175_v49  ;;  %v1174_v51 = vsub.f32 %v1166_v34, %v1172_v50  ;;  %v2104_v49 = vld [vmem:[%s3165_s10 + $0x18] sm:$0xff]  }
 0xe7a   :  { %v1177_v40 = vmul.f32 1.442695, %v1174_v51 }
 0xe7b   :  { %v1092_v39 = vpop.xlane.xlu0 %1091 }
 0xe7c   :  { %v1096_v52 = vsub.f32 %v1088_v38, %v1092_v39 }
 0xe7e   :  { %v1098_v53 = vmul.f32 1.442695, %v1096_v52 }
 0xe7f   :  { %v1095_v56 = vpop.xlane.xlu0 %1094 }
 0xe80   :  { %2147 = vpow2.f32 %v1098_v53  ;;  %v1097_v54 = vsub.f32 %v1089_v43, %v1095_v56 }
 0xe81   :  { %2149 = vpow2.f32 %v1177_v40 }
 0xe82   :  { %v2146_v55 = vpop.eup %2145  ;;  %v1100_v62 = vmul.f32 1.442695, %v1097_v54 }
 0xe83   :  { %v1179_v57 = vsel %vm423_vm6, %v2146_v55, 0.0 }
 0xe84   :  { %1180 = vadd.xlane.f32.xlu1 %v1179_v57  ;;  %2151 = vpow2.f32 %v1100_v62 }
 0xe8a   :  { %v2148_v58 = vpop.eup %2147 }
 0xe8b   :  { %v1102_v59 = vsel %vm423_vm6, %v2148_v58, 0.0  ;;  %v2150_v60 = vpop.eup %2149 }
 0xe8c   :  { %1103 = vadd.xlane.f32.xlu0 %v1102_v59  ;;  %v1182_v61 = vsel %vm423_vm6, %v2150_v60, 0.0  ;;  %v1840_v59 = vld [vmem:[#allocation14 + $0x1] ss:$0 sm:$0xff] }
 0xe8e   :  { %v2152_v1 = vpop.eup %2151 }
 0xe8f   :  { %v1105_v2 = vsel %vm423_vm6, %v2152_v1, 0.0 }
 0xe90   :  { %1183 = vadd.xlane.f32.xlu0 %v1182_v61 }
 0xe94   :  { %1106 = vadd.xlane.f32.xlu0 %v1105_v2 }
 0xe95   :  { %1242 = vrot.lane.b32.xlu1 %v1114_v21, %s2519_s2  ;;  %v2102_v21 = vld [vmem:[%s3161_s6 + $0x18] sm:$0xff]  }
 0xe96   :  { %2018 = vmatpush3.bf16.msra.mxu1 %v2102_v21 }
 0xe97   :  { %2023 = vmatprep.subr.bf16.mxu1 %v2516_v15 }
 0xeaa   :  { %1194 = vrot.lane.b32.xlu0 %v1191_v44, %s2519_s2 }
 0xf11   :  { %v1181_v4 = vpop.xlane.xlu1 %1180 }
 0xf12   :  { %2153 = vrcp.f32 %v1181_v4  ;;  %v2106_v4 = vld [vmem:[%s3167_s12 + $0x28] sm:$0xff]  }
 0xf15   :  { %v1243_v14 = vpop.permute.xlu1 %1242 }
 0xf19   :  { %v1104_v5 = vpop.xlane.xlu0 %1103 }
 0xf1c   :  { %v2154_v9 = vpop.eup %2153 }
 0xf1d   :  { %v1184_v6 = vpop.xlane.xlu0 %1183  ;;  %v1187_v11 = vmul.f32 %v2154_v9, %v2146_v55  ;;  %v1839_v55 = vld [vmem:[#allocation13 + $0x1] ss:$0 sm:$0xff] }
 0xf1e   :  { %2155 = vrcp.f32 %v1184_v6  ;;  %v2108_v6 = vld [vmem:[%s3167_s12 + $0x38] sm:$0xff]  }
 0xf21   :  { %v1107_v7 = vpop.xlane.xlu0 %1106 }
 0xf22   :  { %2157 = vrcp.f32 %v1107_v7  ;;  %v1845_v7 = vld [vmem:[#allocation16 + $0x1] ss:$0 sm:$0xff] }
 0xf23   :  { %2159 = vrcp.f32 %v1104_v5  ;;  %v2107_v5 = vld [vmem:[%s3167_s12 + $0x30] sm:$0xff]  }
 0xf25   :  { %v1195_v8 = vpop.permute.xlu0 %1194 }
 0xf26   :  { %2004 = vmatpush3.bf16.msra.mxu0 %v1195_v8 }
 0xf27   :  { %2009 = vmatprep.subr.bf16.mxu0 %v2516_v15 }
 0xf28   :  { %v2156_v10 = vpop.eup %2155 }
 0xf29   :  { %v1188_v12 = vmul.f32 %v2156_v10, %v2150_v60 }
 0xf2b   :  { %v1192_v13 = vpack.c.bf16 %v1188_v12, %v1187_v11 }
 0xf2c   :  { %v2158_v16 = vpop.eup %2157 }
 0xf2d   :  { %2006 = vmatmul.mubr.msk.bf16.vlgmr.msra.gmra.mrb[24].mxu0 %vm423_vm6, %v1192_v13  ;;  %v2160_v17 = vpop.eup %2159  ;;  %v1111_v18 = vmul.f32 %v2158_v16, %v2152_v1 }
 0xf2e   :  { %2010 = vmatpush3.bf16.msra.mxu0 %v1243_v14  ;;  %2011 = vmatprep.mubr.msk.bf16.mxu0 %vm2517_vm1, %v2516_v15  ;;  %v1110_v19 = vmul.f32 %v2160_v17, %v2148_v58 }
 0xf2f   :  { %2031 = vmatprep.subr.bf16.mxu0 %v2516_v15 }
 0xf30   :  { %v1115_v20 = vpack.c.bf16 %v1111_v18, %v1110_v19 }
 0xf39   :  { %2012 = vmatmul.mubr.msk.bf16.vlgmr.msra.gmra.mrb[24].mxu0 %vm423_vm6, %v1115_v20 }
 0xf3a   :  { %2039 = vmatprep.mubr.msk.bf16.mxu0 %vm2517_vm1, %v2516_v15  ;;  %2032 = vmatpush3.bf16.msra.mxu0 %v2105_v3 }
 0xf3b   :  { %2033 = vmatprep.subr.bf16.mxu0 %v2516_v15 }
 0xf3e   :  { %2034 = vmatpush3.bf16.msra.mxu0 %v2106_v4 }
 0xf3f   :  { %2035 = vmatprep.subr.bf16.mxu0 %v2516_v15 }
 0xf42   :  { %2036 = vmatpush3.bf16.msra.mxu0 %v2107_v5 }
 0xf43   :  { %2037 = vmatprep.subr.bf16.mxu0 %v2516_v15 }
 0xf46   :  { %2038 = vmatpush3.bf16.msra.mxu0 %v2108_v6 }
0x100c   :  { %v1282_v44 = vpop.f32.mrb[24].mxu0 }
0x100d   :  { %v2013_v47 = vpop.f32.mrb[25].mxu0 }
0x100e   :  { %v1285_v35 = vpop.f32.mrb[26].mxu0 }
0x100f   :  { %v1289_v41 = vpack.c.bf16 %v1285_v35, %v1282_v44  ;;  %v2014_v22 = vpop.f32.mrb[27].mxu0 }
0x1011   :  { %2020 = vmatmul.mubr.msk.bf16.vlgmr.msra.gmra.mrb[16].mxu1 %vm253_vm0, %v1289_v41 }
0x1012   :  { %2027 = vmatprep.mubr.msk.bf16.mxu1 %vm2517_vm1, %v2516_v15 }
0x10e4   :  { %v1352_v24 = vpop.f32.mrb[16].mxu1 }
0x10e5   :  { %v1353_v25 = vadd.f32 %v1835_v23, %v1352_v24  ;;  %v2021_v26 = vpop.f32.mrb[17].mxu1 }
0x10e6   :  { %v1355_v31 = vpop.f32.mrb[18].mxu1 }
0x10e7   :  { %v1356_v32 = vadd.f32 %v1835_v23, %v1355_v31  ;;  %v2022_v27 = vpop.f32.mrb[19].mxu1  ;;  %v1359_v28 = vadd.f32 %v1353_v25, %v3006_v63 }
0x10e9   :  { %v1365_v29 = vsel %vm253_vm0, %v1359_v28, 0.0  ;;  %v1360_v30 = vadd.f32 %v1356_v32, %v3008_v0  ;;  %v2103_v0 = vld [vmem:[%s3165_s10 + $0x10] sm:$0xff]  }
0x10ea   :  { %1366 = vadd.xlane.f32.xlu0 %v1365_v29  ;;  %2024 = vmatpush3.bf16.msra.mxu1 %v2103_v0 }
0x10eb   :  { %v1368_v33 = vsel %vm253_vm0, %v1360_v30, 0.0  ;;  %2025 = vmatprep.subr.bf16.mxu1 %v2516_v15 }
0x10ec   :  { %1369 = vadd.xlane.f32.xlu1 %v1368_v33 }
0x10ee   :  { %2026 = vmatpush3.bf16.msra.mxu1 %v2104_v49 }
0x10ef   :  { %2043 = vmatprep.subr.bf16.mxu1 %v2516_v15 }
0x1177   :  { %v1367_v34 = vpop.xlane.xlu0 %1366 }
0x1178   :  { %v1371_v36 = vmul.f32 0.03125, %v1367_v34 }
0x1179   :  { %v1370_v37 = vpop.xlane.xlu1 %1369 }
0x117a   :  { %v1373_v38 = vsub.f32 %v1359_v28, %v1371_v36  ;;  %v1372_v42 = vmul.f32 0.03125, %v1370_v37  ;;  %v1857_v28 = vld [vmem:[#allocation17 + $0x1] ss:$0 sm:$0xff] }
0x117c   :  { %v1374_v43 = vsub.f32 %v1360_v30, %v1372_v42  ;;  %v1375_v45 = vmul.f32 %v1373_v38, %v1373_v38 }
0x117e   :  { %v1377_v46 = vsel %vm253_vm0, %v1375_v45, 0.0  ;;  %v1376_v48 = vmul.f32 %v1374_v43, %v1374_v43 }
0x117f   :  { %1378 = vadd.xlane.f32.xlu0 %v1377_v46 }
0x1180   :  { %v1380_v63 = vsel %vm253_vm0, %v1376_v48, 0.0 }
0x1183   :  { %1381 = vadd.xlane.f32.xlu0 %v1380_v63 }
0x120c   :  { %v1379_v50 = vpop.xlane.xlu0 %1378 }
0x120d   :  { %v1383_v51 = vmul.f32 0.03125, %v1379_v50 }
0x120f   :  { %v1385_v39 = vadd.f32 1e-12, %v1383_v51 }
0x1210   :  { %v1382_v52 = vpop.xlane.xlu0 %1381 }
0x1211   :  { %2161 = vrsqrt.f32 %v1385_v39  ;;  %v1384_v40 = vmul.f32 0.03125, %v1382_v52 }
0x1213   :  { %v1386_v53 = vadd.f32 1e-12, %v1384_v40 }
0x1215   :  { %2163 = vrsqrt.f32 %v1386_v53  ;;  %v2109_v53 = vld [vmem:[%s3171_s16] sm:$0xff]  }
0x121b   :  { %v2162_v56 = vpop.eup %2161 }
0x121c   :  { %v1389_v54 = vmul.f32 %v2162_v56, %v1373_v38  ;;  %v2110_v56 = vld [vmem:[%s3171_s16 + $0x8] sm:$0xff]  }
0x121e   :  { %v1397_v57 = vmul.f32 %v1839_v55, %v1389_v54 }
0x121f   :  { %v2164_v62 = vpop.eup %2163 }
0x1220   :  { %v1390_v58 = vmul.f32 %v2164_v62, %v1374_v43  ;;  %v1405_v61 = vadd.f32 %v1840_v59, %v1397_v57 }
0x1222   :  { %v1398_v60 = vmul.f32 %v1839_v55, %v1390_v58 }
0x1224   :  { %v1406_v1 = vadd.f32 %v1840_v59, %v1398_v60 }
0x1226   :  { %v1407_v2 = vpack.c.bf16 %v1406_v1, %v1405_v61 }
0x1228   :  { %2028 = vmatmul.mubr.msk.bf16.vlgmr.msra.gmra.mrb[20].mxu1 %vm253_vm0, %v1407_v2  ;;  %v1864_v2 = vld [vmem:[#allocation20 + $0x1] ss:$0 sm:$0xff] }
0x1229   :  { %2047 = vmatprep.mubr.msk.bf16.mxu1 %vm2517_vm1, %v2516_v15  ;;  %2044 = vmatpush3.bf16.msra.mxu1 %v2109_v53 }
0x122a   :  { %2045 = vmatprep.subr.bf16.mxu1 %v2516_v15 }
0x122d   :  { %2046 = vmatpush3.bf16.msra.mxu1 %v2110_v56 }
0x122e   :  { %2051 = vmatprep.subr.bf16.mxu1 %v2516_v15 }
0x12fb   :  { %v1470_v8 = vpop.f32.mrb[20].mxu1 }
0x12fc   :  { %v1471_v9 = vadd.f32 %v1845_v7, %v1470_v8  ;;  %v2029_v10 = vpop.f32.mrb[21].mxu1 }
0x12fd   :  { %v1473_v11 = vpop.f32.mrb[22].mxu1 }
0x12fe   :  { %v1479_v12 = vmul.f32 0.044715, %v1471_v9  ;;  %v1474_v13 = vadd.f32 %v1845_v7, %v1473_v11  ;;  %v2030_v14 = vpop.f32.mrb[23].mxu1  ;;  %v1477_v24 = vmul.f32 0.5, %v1471_v9 }
0x12ff   :  { %v1865_v14 = vld [vmem:[#allocation22] ss:$0 sm:$0xff] }
0x1300   :  { %v1481_v16 = vmul.f32 %v1479_v12, %v1471_v9  ;;  %v1480_v17 = vmul.f32 0.044715, %v1474_v13  ;;  %v1478_v25 = vmul.f32 0.5, %v1474_v13  ;;  %v2111_v12 = vld [vmem:[%s3173_s18] sm:$0xff]  }
0x1302   :  { %v1483_v18 = vmul.f32 %v1481_v16, %v1471_v9  ;;  %v1482_v19 = vmul.f32 %v1480_v17, %v1474_v13 }
0x1304   :  { %v1485_v20 = vadd.f32 %v1483_v18, %v1471_v9  ;;  %v1484_v21 = vmul.f32 %v1482_v19, %v1474_v13 }
0x1306   :  { %v1487_v44 = vmul.f32 0.7978846, %v1485_v20  ;;  %v1486_v47 = vadd.f32 %v1484_v21, %v1474_v13  ;;  %v2112_v13 = vld [vmem:[%s3173_s18 + $0x8] sm:$0xff]   ;;  %s2461_s18 = scalar_lea.vmem %s1777_s25, 32 }
0x1307   :  { %p2462_p6 = scmp.ne.s32.totalorder %s1777_s25, %s2461_s18  ;;  %p2467_p8 = scmp.lt.s32.totalorder %s2461_s18, %s2461_s18 }
0x1308   :  { %2165 = vtanh.f32 %v1487_v44  ;;  %v1488_v35 = vmul.f32 0.7978846, %v1486_v47 }
0x1309   :  { %p2468_p9 = por %p2467_p8, %p2466_p7 }
0x130a   :  { %2167 = vtanh.f32 %v1488_v35 }
0x130b   :  { %p2469_p10 = pnand %p2468_p9, %p2462_p6 }
0x1312   :  { %v2166_v41 = vpop.eup %2165 }
0x1313   :  { %v1491_v22 = vadd.f32 1.0, %v2166_v41 }
0x1314   :  { %v2168_v23 = vpop.eup %2167 }
0x1315   :  { %v1492_v26 = vadd.f32 1.0, %v2168_v23  ;;  %v1493_v31 = vmul.f32 %v1491_v22, %v1477_v24 }
0x1317   :  { %v1494_v32 = vmul.f32 %v1492_v26, %v1478_v25 }
0x1319   :  { %v1495_v27 = vpack.c.bf16 %v1494_v32, %v1493_v31 }
0x131b   :  { %2040 = vmatmul.mubr.msk.bf16.vlgmr.msra.gmra.mrb[28].mxu0 %vm871_vm7, %v1495_v27 }
0x13ee   :  { %v1574_v29 = vpop.f32.mrb[28].mxu0 }
0x13ef   :  { %v2041_v30 = vpop.f32.mrb[29].mxu0  ;;  %v1575_v34 = vadd.f32 %v1857_v28, %v1574_v29 }
0x13f0   :  { %v1577_v33 = vpop.f32.mrb[30].mxu0 }
0x13f1   :  { %v1578_v36 = vadd.f32 %v1857_v28, %v1577_v33  ;;  %v2042_v37 = vpop.f32.mrb[31].mxu0  ;;  %v1581_v43 = vadd.f32 %v1575_v34, %v1405_v61  ;;  %v1863_v61 = vld [vmem:[#allocation19 + $0x1] ss:$0 sm:$0xff] }
0x13f3   :  { %v1582_v38 = vadd.f32 %v1578_v36, %v1406_v1  ;;  %v1587_v45 = vsel %vm253_vm0, %v1581_v43, 0.0 }
0x13f5   :  { %v1590_v42 = vsel %vm253_vm0, %v1582_v38, 0.0 }
0x13f6   :  { %1591 = vadd.xlane.f32.xlu0 %v1590_v42 }
0x13fa   :  { %1588 = vadd.xlane.f32.xlu0 %v1587_v45 }
0x1483   :  { %v1592_v46 = vpop.xlane.xlu0 %1591 }
0x1484   :  { %v1594_v48 = vmul.f32 0.03125, %v1592_v46 }
0x1486   :  { %v1596_v63 = vsub.f32 %v1582_v38, %v1594_v48 }
0x1487   :  { %v1589_v0 = vpop.xlane.xlu0 %1588 }
0x1488   :  { %v1593_v49 = vmul.f32 0.03125, %v1589_v0  ;;  %v1598_v50 = vmul.f32 %v1596_v63, %v1596_v63 }
0x148a   :  { %v1595_v51 = vsub.f32 %v1581_v43, %v1593_v49  ;;  %v1602_v39 = vsel %vm253_vm0, %v1598_v50, 0.0 }
0x148b   :  { %1603 = vadd.xlane.f32.xlu0 %v1602_v39 }
0x148c   :  { %v1597_v52 = vmul.f32 %v1595_v51, %v1595_v51 }
0x148e   :  { %v1599_v40 = vsel %vm253_vm0, %v1597_v52, 0.0 }
0x148f   :  { %1600 = vadd.xlane.f32.xlu0 %v1599_v40 }
0x1518   :  { %v1604_v54 = vpop.xlane.xlu0 %1603 }
0x1519   :  { %v1606_v55 = vmul.f32 0.03125, %v1604_v54 }
0x151b   :  { %v1608_v62 = vadd.f32 1e-12, %v1606_v55 }
0x151c   :  { %v1601_v57 = vpop.xlane.xlu0 %1600 }
0x151d   :  { %2169 = vrsqrt.f32 %v1608_v62  ;;  %v1605_v58 = vmul.f32 0.03125, %v1601_v57 }
0x151f   :  { %v1607_v59 = vadd.f32 1e-12, %v1605_v58 }
0x1521   :  { %2171 = vrsqrt.f32 %v1607_v59 }
0x1527   :  { %v2170_v60 = vpop.eup %2169 }
0x1528   :  { %v1612_v1 = vmul.f32 %v2170_v60, %v1596_v63 }
0x152a   :  { %v1620_v3 = vmul.f32 %v1863_v61, %v1612_v1 }
0x152b   :  { %v2172_v4 = vpop.eup %2171 }
0x152c   :  { %v1628_v5 = vadd.f32 %v1864_v2, %v1620_v3  ;;  %v1611_v6 = vmul.f32 %v2172_v4, %v1595_v51 }
0x152e   :  { %v1619_v7 = vmul.f32 %v1863_v61, %v1611_v6  ;;  %v1630_v9 = vrot.slane %v1628_v5, 7 }
0x1530   :  { %v1627_v8 = vadd.f32 %v1864_v2, %v1619_v7 }
0x1532   :  { %v1633_v10 = vsel %vm1632_vm8, %v1627_v8, %v1630_v9 }
0x1533   :  { %v1634_v11 = vpack.c.bf16 %v1633_v10, %v1633_v10 }
0x1535   :  { %2048 = vmatmul.mubr.msk.bf16.vlgmr.msra.gmra.mrb[24].mxu1 %vm253_vm0, %v1634_v11 }
0x1536   :  { %2055 = vmatprep.mubr.msk.bf16.mxu1 %vm2517_vm1, %v2516_v15  ;;  %2052 = vmatpush3.bf16.msra.mxu1 %v2111_v12 }
0x1537   :  { %2053 = vmatprep.subr.bf16.mxu1 %v2516_v15  ;;  %v1869_v15 = vld [vmem:[%s3174_s19] ss:$0 sm:$0xff] }
0x153a   :  { %2054 = vmatpush3.bf16.msra.mxu1 %v2112_v13 }
0x1608   :  { %v1695_v16 = vpop.f32.mrb[24].mxu1 }
0x1609   :  { %v1696_v17 = vadd.f32 %v1865_v14, %v1695_v16  ;;  %v2049_v18 = vpop.f32.mrb[25].mxu1 }
0x160a   :  { %v1698_v19 = vpop.f32.mrb[26].mxu1 }
0x160b   :  { %2173 = vtanh.f32 %v1696_v17  ;;  %v2050_v20 = vpop.f32.mrb[27].mxu1 }
0x1615   :  { %v2174_v21 = vpop.eup %2173 }
0x1616   :  { %v1702_v44 = vpack.c.bf16 %v2174_v21, %v2174_v21 }
0x1618   :  { %2056 = vmatmul.mubr.msk.bf16.vlgmr.msra.gmra.mrb[28].mxu1 %vm253_vm0, %v1702_v44 }
0x16eb   :  { %v1763_v47 = vpop.f32.mrb[28].mxu1 }
0x16ec   :  { %v1764_v35 = vadd.f32 %v1869_v15, %v1763_v47  ;;  %v2057_v41 = vpop.f32.mrb[29].mxu1 }
0x16ed   :  { %v1766_v22 = vpop.f32.mrb[30].mxu1 }
0x16ee   :  { %1769 = vst [vmem:[#allocation23] sm:$0x3] %v1764_v35  ;;  %v2058_v23 = vpop.f32.mrb[31].mxu1 }
0x16ef   :  { %2472 = shalt.err (!%p2469_p10)
}
0x16f0   :  { %s2473_s19 = scalar_lea.hbm %s3175_s20, 32 }
0x16f1   :  { %p2474_p11 = scmp.ne.s32.totalorder %s3175_s20, %s2473_s19  ;;  %p2477_p12 = scmp.lt.u32.totalorder %s2473_s19, %s3175_s20 }
0x16f3   :  { %p2479_p13 = pnand %p2477_p12, %p2474_p11 }
0x16f5   :  { %2482 = shalt.err (!%p2479_p13)
}
0x16f6   :  { %1779 = dma.vmem_to_hbm [thread:$0]  %s1777_s25, 32, %s3175_s20, [#allocation4]  }
0x16f7   :  { %2497 = dma.done.wait [#allocation4], 32  }
0x16f8   :  { %2498 = vsyncadd [#allocation4], 4294967264 }
0x16f9   :  { %1783 = vsyncpa [#allocation3], 1 }
0x16fa   :  { %1784 = vsyncpa [#allocation6], 1 }
0x16fb   :  { %1785 = vsyncpa [#allocation9], 1 }
0x16fc   :  { %1786 = vsyncpa [#allocation12], 1 }
0x16fd   :  { %1787 = vsyncpa [#allocation15], 1 }
0x16fe   :  { %1788 = vsyncpa [#allocation18], 1 }
0x16ff   :  { %1789 = vsyncpa [#allocation21], 1 }
0x1700   :  { %1790 = vsyncpa [#allocation4], 1 }

</bundles_post_ra>
